<compile_context>
chip_gen: v6e
topology: v6e:2x2x1
jax: 0.10.0
libtpu: 0.0.40
codegen_flags: <defaults>
</compile_context>

<pallas_src>
import functools

import jax
import jax.numpy as jnp
from jax import lax
from jax.experimental import pallas as pl
from jax.experimental.pallas import tpu as pltpu


def _fpn_kernel(x_ref, w1_ref, b1_ref, w2_ref, b2_ref, out_ref, *, w_valid):
    # x_ref:   (NB, H, Wp, Cin)    f32  (cast to bf16 in VMEM)
    # w1_ref:  (Cin, Cout)         bf16 -- 1x1 lateral conv weight
    # b1_ref:  (1, Cout)           f32
    # w2_ref:  (3, 3*Cout, Cout)   bf16 -- 3x3 conv weight, one (kh,cin)-major
    #                                      matrix per kw tap
    # b2_ref:  (1, Cout)           f32
    # out_ref: (NB, H, Wp, Cout)   f32 or bf16
    NB, H, Wp, Cin = x_ref.shape
    Cout = out_ref.shape[3]
    M = NB * H * Wp
    R = NB * H

    # ---- 1x1 lateral conv: one matmul over every pixel in the block ----
    x = x_ref[...].reshape(M, Cin).astype(jnp.bfloat16)          # in-VMEM cast
    lat = jnp.dot(x, w1_ref[...], preferred_element_type=jnp.float32)
    lat = lat + b1_ref[...]

    # Single f32 -> bf16 cast of the lateral activation.
    lat_b = lat.astype(jnp.bfloat16)

    # Small, hoisted iota (computed once; lane-dense so it lowers cleanly).
    w_iota = lax.broadcasted_iota(jnp.int32, (1, Wp, Cout), 1)

    # Zero the padded W columns (static branch; only traced when W was padded).
    if w_valid < Wp:
        valid = (w_iota < w_valid).astype(jnp.bfloat16)
        lat_b = (lat_b.reshape(R, Wp, Cout) * valid).reshape(M, Cout)

    lat4 = lat_b.reshape(NB, H, Wp, Cout)

    # ---- 3 row-shifted bf16 slabs (per-image halo via outer-dim concat) ----
    zrow = jnp.zeros((NB, 1, Wp, Cout), jnp.bfloat16)
    up = jnp.concatenate([zrow, lat4[:, : H - 1]], axis=1)       # lat[h-1, w]
    down = jnp.concatenate([lat4[:, 1:], zrow], axis=1)          # lat[h+1, w]
    slab = jnp.concatenate([up, lat4, down], axis=-1).reshape(M, 3 * Cout)

    # ---- 3 matmuls, one per kw tap, K = 3*Cout each ----
    p0 = jnp.dot(slab, w2_ref[0], preferred_element_type=jnp.float32)  # kw=0
    p1 = jnp.dot(slab, w2_ref[1], preferred_element_type=jnp.float32)  # kw=1
    p1 = p1 + b2_ref[...]
    p2 = jnp.dot(slab, w2_ref[2], preferred_element_type=jnp.float32)  # kw=2

    # ---- dw shifts applied to the f32 OUTPUT: 2 rolls + 2 masked adds ----
    not_w0 = (w_iota != 0).astype(jnp.float32)        # kill roll wrap at w==0
    not_wl = (w_iota != Wp - 1).astype(jnp.float32)   # kill roll wrap at w==Wp-1
    acc = p1.reshape(R, Wp, Cout)
    acc = acc + pltpu.roll(p0.reshape(R, Wp, Cout), shift=1, axis=1) * not_w0
    acc = acc + pltpu.roll(p2.reshape(R, Wp, Cout), shift=Wp - 1, axis=1) * not_wl

    out_ref[...] = acc.reshape(NB, H, Wp, Cout).astype(out_ref.dtype)


def _pick_n_block(n, per_image_bytes, budget=8 * 2**20):
    """Largest divisor of n that fits the VMEM budget and keeps grid >= 2."""
    for d in range(n, 0, -1):
        if n % d:
            continue
        if d * per_image_bytes <= budget and (n // d >= 2 or d == n == 1):
            return d
    return 1


def fpn_forward_nhwc(x_nhwc, l_weight, l_bias, f_weight, f_bias,
                     *, out_dtype=jnp.float32, n_block=None):
    """NHWC-native fast path. x_nhwc: (N, H, W, Cin); conv weights in PyTorch OIHW.

    out_dtype=jnp.bfloat16 halves output HBM writeback when downstream accepts it.
    """
    N, H, W, Cin = x_nhwc.shape
    Cout = l_weight.shape[0]

    # Pad W to a multiple of 8 so every reshape is a free re-view (prod W~25).
    Wp = -(-W // 8) * 8
    x_p = x_nhwc if Wp == W else jnp.pad(
        x_nhwc, ((0, 0), (0, 0), (0, Wp - W), (0, 0)))

    # 1x1 conv weight (Cout, Cin, 1, 1) -> (Cin, Cout), bf16.
    w1 = jnp.transpose(l_weight[:, :, 0, 0], (1, 0)).astype(jnp.bfloat16)
    b1 = l_bias.reshape(1, Cout).astype(jnp.float32)
    # 3x3 conv weight (O, I, kh, kw) -> (kw, kh, I, O) -> (3, 3*Cout, Cout):
    # one (kh*Cin + cin)-major matrix per kw tap, matching the slab layout.
    w2 = jnp.transpose(f_weight, (3, 2, 1, 0)).reshape(3, 3 * Cout, Cout)
    w2 = w2.astype(jnp.bfloat16)
    b2 = f_bias.reshape(1, Cout).astype(jnp.float32)

    # Per-image VMEM footprint estimate: double-buffered I/O blocks + live
    # intermediates (lat f32 + lat bf16 + slab bf16 + 3 f32 partials).
    out_bytes = jnp.dtype(out_dtype).itemsize
    per_image = H * Wp * (Cin * 4 + Cout * out_bytes) * 2
    per_image += H * Wp * Cout * (4 + 2 + 6 + 12)
    if n_block is None:
        n_block = _pick_n_block(N, per_image)
    grid_n = N // n_block

    weight_bytes = w1.size * 2 + w2.size * 2 + (b1.size + b2.size) * 4
    est_vmem = n_block * per_image + weight_bytes
    cp_kwargs = {}
    if est_vmem > 12 * 2**20:
        # Only raise the scoped-VMEM limit when the blocks actually need it
        # (v5e default 16 MiB; keep headroom under v7x's 64 MiB physical).
        cp_kwargs["vmem_limit_bytes"] = int(min(est_vmem * 3 // 2, 60 * 2**20))

    flops = 2 * N * H * W * Cout * (Cin + 9 * Cout)
    bytes_accessed = int(x_p.size) * 4 + weight_bytes + N * H * Wp * Cout * out_bytes

    kernel = functools.partial(_fpn_kernel, w_valid=W)
    out = pl.pallas_call(
        kernel,
        out_shape=jax.ShapeDtypeStruct((N, H, Wp, Cout), out_dtype),
        grid_spec=pltpu.PrefetchScalarGridSpec(
            num_scalar_prefetch=0,
            grid=(grid_n,),
            in_specs=[
                pl.BlockSpec((n_block, H, Wp, Cin), lambda n: (n, 0, 0, 0)),
                pl.BlockSpec((Cin, Cout), lambda n: (0, 0)),
                pl.BlockSpec((1, Cout), lambda n: (0, 0)),
                pl.BlockSpec((3, 3 * Cout, Cout), lambda n: (0, 0, 0)),
                pl.BlockSpec((1, Cout), lambda n: (0, 0)),
            ],
            out_specs=pl.BlockSpec((n_block, H, Wp, Cout), lambda n: (n, 0, 0, 0)),
        ),
        compiler_params=pltpu.CompilerParams(
            dimension_semantics=("parallel",), **cp_kwargs),
        cost_estimate=pl.CostEstimate(
            flops=flops, transcendentals=0, bytes_accessed=bytes_accessed),
    )(x_p, w1, b1, w2, b2)

    if Wp != W:
        out = out[:, :, :W, :]
    return out


def fpn_forward(inputs, params_arrays, out_dtype=jnp.float32):
    """Mirror of FPN.forward (NCHW in / NCHW out); PyTorch-interface parity only.

    Production callers should use fpn_forward_nhwc to avoid the layout transposes.
    """
    l_weight, l_bias, f_weight, f_bias = params_arrays
    x_nhwc = jnp.transpose(inputs[0], (0, 2, 3, 1))
    out_nhwc = fpn_forward_nhwc(x_nhwc, l_weight, l_bias, f_weight, f_bias,
                                out_dtype=out_dtype)
    return (jnp.transpose(out_nhwc, (0, 3, 1, 2)),)


def _reference_fpn_nhwc(x, l_w, l_b, f_w, f_b, quantize=False):
    """Pure-JAX reference (NHWC activations, OIHW weights).

    quantize=True mimics the kernel's bf16 operand rounding with f32
    accumulation; quantize=False is the exact f32 module semantics.
    """
    def q(a):
        return a.astype(jnp.bfloat16).astype(jnp.float32) if quantize else a

    lat = lax.conv_general_dilated(
        q(x), q(l_w), window_strides=(1, 1), padding="VALID",
        dimension_numbers=("NHWC", "OIHW", "NHWC"),
    ) + l_b[None, None, None, :]
    if quantize:
        lat = q(lat)
    out = lax.conv_general_dilated(
        q(lat), q(f_w), window_strides=(1, 1), padding=((1, 1), (1, 1)),
        dimension_numbers=("NHWC", "OIHW", "NHWC"),
    ) + f_b[None, None, None, :]
    return out


if __name__ == "__main__":
    # Small but lane-friendly shapes (BEVFormer-tiny production: Cin=2048, Cout=256).
    N, Cin, Cout, H, W = 2, 128, 128, 16, 16

    key = jax.random.PRNGKey(0)
    k_x, k_lw, k_lb, k_fw, k_fb, k_x2 = jax.random.split(key, 6)

    x_nhwc = jax.random.normal(k_x, (N, H, W, Cin), dtype=jnp.float32)
    l_weight = jax.random.normal(k_lw, (Cout, Cin, 1, 1), dtype=jnp.float32) * 0.05
    l_bias = jax.random.normal(k_lb, (Cout,), dtype=jnp.float32) * 0.1
    f_weight = jax.random.normal(k_fw, (Cout, Cout, 3, 3), dtype=jnp.float32) * 0.05
    f_bias = jax.random.normal(k_fb, (Cout,), dtype=jnp.float32) * 0.1
    params = (l_weight, l_bias, f_weight, f_bias)

    # ---- NHWC fast path, f32 output ----
    out = jax.block_until_ready(fpn_forward_nhwc(x_nhwc, *params))
    assert out.shape == (N, H, W, Cout), out.shape

    ref_q = _reference_fpn_nhwc(x_nhwc, *params, quantize=True)
    err_q = float(jnp.max(jnp.abs(out - ref_q)))
    assert jnp.allclose(out, ref_q, atol=2e-3, rtol=2e-3), err_q

    ref = _reference_fpn_nhwc(x_nhwc, *params, quantize=False)
    err = float(jnp.max(jnp.abs(out - ref)))
    assert jnp.allclose(out, ref, atol=6e-2, rtol=6e-2), err

    # ---- bf16 output variant (downstream-permitting HBM-writeback saver) ----
    out_bf = jax.block_until_ready(
        fpn_forward_nhwc(x_nhwc, *params, out_dtype=jnp.bfloat16))
    assert out_bf.dtype == jnp.bfloat16 and out_bf.shape == (N, H, W, Cout)
    err_bf = float(jnp.max(jnp.abs(out_bf.astype(jnp.float32) - ref_q)))
    assert err_bf < 3e-2, err_bf

    # ---- W not divisible by 8 (production C5 is ~15x25): padded path ----
    H2, W2 = 9, 12
    x2 = jax.random.normal(k_x2, (N, H2, W2, Cin), dtype=jnp.float32)
    out2 = jax.block_until_ready(fpn_forward_nhwc(x2, *params))
    assert out2.shape == (N, H2, W2, Cout), out2.shape
    ref2_q = _reference_fpn_nhwc(x2, *params, quantize=True)
    err2 = float(jnp.max(jnp.abs(out2 - ref2_q)))
    assert jnp.allclose(out2, ref2_q, atol=2e-3, rtol=2e-3), err2

    # ---- NCHW wrapper (PyTorch interface parity) ----
    x_nchw = jnp.transpose(x_nhwc, (0, 3, 1, 2))
    out_nchw = jax.block_until_ready(fpn_forward([x_nchw], params)[0])
    assert out_nchw.shape == (N, Cout, H, W), out_nchw.shape
    assert jnp.allclose(out_nchw, jnp.transpose(out, (0, 3, 1, 2)), atol=1e-6)

    print("KERNEL_OK")
</pallas_src>

<mosaic_0001>
module attributes {stable_mosaic.version = 11 : i64} {
  func.func @_fpn_kernel(%arg0: i32, %arg1: memref<1x16x16x128xf32, #tpu.memory_space<vmem>>, %arg2: memref<128x128xbf16, #tpu.memory_space<vmem>>, %arg3: memref<1x128xf32, #tpu.memory_space<vmem>>, %arg4: memref<3x384x128xbf16, #tpu.memory_space<vmem>>, %arg5: memref<1x128xf32, #tpu.memory_space<vmem>>, %arg6: memref<1x16x16x128xf32, #tpu.memory_space<vmem>>) attributes {dimension_semantics = [#tpu.dimension_semantics<parallel>], iteration_bounds = array<i64: 2>, scalar_prefetch = 0 : i64, scratch_operands = 0 : i64, tpu.core_type = #tpu.core_type<tc>, window_params = [{transform_indices = @transform_0, window_bounds = array<i64: 1, 16, 16, 128>}, {pipeline_mode = #tpu.pipeline_mode<synchronous>, transform_indices = @transform_1, window_bounds = array<i64: 128, 128>}, {pipeline_mode = #tpu.pipeline_mode<synchronous>, transform_indices = @transform_2, window_bounds = array<i64: 1, 128>}, {pipeline_mode = #tpu.pipeline_mode<synchronous>, transform_indices = @transform_3, window_bounds = array<i64: 3, 384, 128>}, {pipeline_mode = #tpu.pipeline_mode<synchronous>, transform_indices = @transform_4, window_bounds = array<i64: 1, 128>}, {transform_indices = @transform_5, window_bounds = array<i64: 1, 16, 16, 128>}]} {
    %c0 = arith.constant 0 : index
    %c0_0 = arith.constant 0 : index
    %c0_1 = arith.constant 0 : index
    %c0_2 = arith.constant 0 : index
    %0 = vector.load %arg1[%c0, %c0_0, %c0_1, %c0_2] : memref<1x16x16x128xf32, #tpu.memory_space<vmem>>, vector<1x16x16x128xf32>
    %1 = vector.shape_cast %0 : vector<1x16x16x128xf32> to vector<256x128xf32>
    %2 = arith.truncf %1 : vector<256x128xf32> to vector<256x128xbf16>
    %c0_3 = arith.constant 0 : index
    %c0_4 = arith.constant 0 : index
    %3 = vector.load %arg2[%c0_3, %c0_4] : memref<128x128xbf16, #tpu.memory_space<vmem>>, vector<128x128xbf16>
    %cst = arith.constant dense<0.000000e+00> : vector<256x128xf32>
    %4 = tpu.matmul %2, %3, %cst {dimension_numbers = #tpu.dot_dimension_numbers<[1], [0], [0], [1], [0, 0, 1, 1], [], []>} : vector<256x128xbf16>, vector<128x128xbf16>, vector<256x128xf32> -> vector<256x128xf32>
    %c0_5 = arith.constant 0 : index
    %c0_6 = arith.constant 0 : index
    %5 = vector.load %arg3[%c0_5, %c0_6] : memref<1x128xf32, #tpu.memory_space<vmem>>, vector<1x128xf32>
    %6 = vector.broadcast %5 : vector<1x128xf32> to vector<256x128xf32>
    %7 = arith.addf %4, %6 : vector<256x128xf32>
    %8 = arith.truncf %7 : vector<256x128xf32> to vector<256x128xbf16>
    %9 = tpu.iota {dimensions = array<i32: 1>} : vector<1x16x128xi32>
    %10 = vector.shape_cast %8 : vector<256x128xbf16> to vector<1x16x16x128xbf16>
    %cst_7 = arith.constant 0.000000e+00 : bf16
    %11 = vector.broadcast %cst_7 : bf16 to vector<1x1x16x128xbf16>
    %12 = vector.extract_strided_slice %10 {offsets = [0, 0, 0, 0], sizes = [1, 15, 16, 128], strides = [1, 1, 1, 1]} : vector<1x16x16x128xbf16> to vector<1x15x16x128xbf16>
    %13 = tpu.concatenate %11, %12 in 1 : vector<1x1x16x128xbf16>, vector<1x15x16x128xbf16> -> vector<1x16x16x128xbf16>
    %14 = vector.extract_strided_slice %10 {offsets = [0, 1, 0, 0], sizes = [1, 15, 16, 128], strides = [1, 1, 1, 1]} : vector<1x16x16x128xbf16> to vector<1x15x16x128xbf16>
    %15 = tpu.concatenate %14, %11 in 1 : vector<1x15x16x128xbf16>, vector<1x1x16x128xbf16> -> vector<1x16x16x128xbf16>
    %16 = tpu.concatenate %13, %10, %15 in 3 : vector<1x16x16x128xbf16>, vector<1x16x16x128xbf16>, vector<1x16x16x128xbf16> -> vector<1x16x16x384xbf16>
    %17 = vector.shape_cast %16 : vector<1x16x16x384xbf16> to vector<256x384xbf16>
    %c0_8 = arith.constant 0 : index
    %c0_9 = arith.constant 0 : index
    %c0_10 = arith.constant 0 : index
    %18 = vector.load %arg4[%c0_8, %c0_9, %c0_10] : memref<3x384x128xbf16, #tpu.memory_space<vmem>>, vector<1x384x128xbf16>
    %19 = vector.shape_cast %18 : vector<1x384x128xbf16> to vector<384x128xbf16>
    %cst_11 = arith.constant dense<0.000000e+00> : vector<256x128xf32>
    %20 = tpu.matmul %17, %19, %cst_11 {dimension_numbers = #tpu.dot_dimension_numbers<[1], [0], [0], [1], [0, 0, 1, 1], [], []>} : vector<256x384xbf16>, vector<384x128xbf16>, vector<256x128xf32> -> vector<256x128xf32>
    %c1 = arith.constant 1 : index
    %c0_12 = arith.constant 0 : index
    %c0_13 = arith.constant 0 : index
    %21 = vector.load %arg4[%c1, %c0_12, %c0_13] : memref<3x384x128xbf16, #tpu.memory_space<vmem>>, vector<1x384x128xbf16>
    %22 = vector.shape_cast %21 : vector<1x384x128xbf16> to vector<384x128xbf16>
    %cst_14 = arith.constant dense<0.000000e+00> : vector<256x128xf32>
    %23 = tpu.matmul %17, %22, %cst_14 {dimension_numbers = #tpu.dot_dimension_numbers<[1], [0], [0], [1], [0, 0, 1, 1], [], []>} : vector<256x384xbf16>, vector<384x128xbf16>, vector<256x128xf32> -> vector<256x128xf32>
    %c0_15 = arith.constant 0 : index
    %c0_16 = arith.constant 0 : index
    %24 = vector.load %arg5[%c0_15, %c0_16] : memref<1x128xf32, #tpu.memory_space<vmem>>, vector<1x128xf32>
    %25 = vector.broadcast %24 : vector<1x128xf32> to vector<256x128xf32>
    %26 = arith.addf %23, %25 : vector<256x128xf32>
    %c2 = arith.constant 2 : index
    %c0_17 = arith.constant 0 : index
    %c0_18 = arith.constant 0 : index
    %27 = vector.load %arg4[%c2, %c0_17, %c0_18] : memref<3x384x128xbf16, #tpu.memory_space<vmem>>, vector<1x384x128xbf16>
    %28 = vector.shape_cast %27 : vector<1x384x128xbf16> to vector<384x128xbf16>
    %cst_19 = arith.constant dense<0.000000e+00> : vector<256x128xf32>
    %29 = tpu.matmul %17, %28, %cst_19 {dimension_numbers = #tpu.dot_dimension_numbers<[1], [0], [0], [1], [0, 0, 1, 1], [], []>} : vector<256x384xbf16>, vector<384x128xbf16>, vector<256x128xf32> -> vector<256x128xf32>
    %c0_i32 = arith.constant 0 : i32
    %30 = vector.broadcast %c0_i32 : i32 to vector<1x16x128xi32>
    %31 = arith.cmpi ne, %9, %30 : vector<1x16x128xi32>
    %32 = arith.extui %31 : vector<1x16x128xi1> to vector<1x16x128xi32>
    %33 = arith.sitofp %32 : vector<1x16x128xi32> to vector<1x16x128xf32>
    %c15_i32 = arith.constant 15 : i32
    %34 = vector.broadcast %c15_i32 : i32 to vector<1x16x128xi32>
    %35 = arith.cmpi ne, %9, %34 : vector<1x16x128xi32>
    %36 = arith.extui %35 : vector<1x16x128xi1> to vector<1x16x128xi32>
    %37 = arith.sitofp %36 : vector<1x16x128xi32> to vector<1x16x128xf32>
    %38 = vector.shape_cast %26 : vector<256x128xf32> to vector<16x16x128xf32>
    %39 = vector.shape_cast %20 : vector<256x128xf32> to vector<16x16x128xf32>
    %c1_i32 = arith.constant 1 : i32
    %40 = tpu.dynamic_rotate %39 by %c1_i32 dim 1 : vector<16x16x128xf32>, i32 -> vector<16x16x128xf32>
    %41 = vector.broadcast %33 : vector<1x16x128xf32> to vector<16x16x128xf32>
    %42 = arith.mulf %40, %41 : vector<16x16x128xf32>
    %43 = arith.addf %38, %42 : vector<16x16x128xf32>
    %44 = vector.shape_cast %29 : vector<256x128xf32> to vector<16x16x128xf32>
    %c15_i32_20 = arith.constant 15 : i32
    %45 = tpu.dynamic_rotate %44 by %c15_i32_20 dim 1 : vector<16x16x128xf32>, i32 -> vector<16x16x128xf32>
    %46 = vector.broadcast %37 : vector<1x16x128xf32> to vector<16x16x128xf32>
    %47 = arith.mulf %45, %46 : vector<16x16x128xf32>
    %48 = arith.addf %43, %47 : vector<16x16x128xf32>
    %49 = vector.shape_cast %48 : vector<16x16x128xf32> to vector<1x16x16x128xf32>
    %c0_21 = arith.constant 0 : index
    %c0_22 = arith.constant 0 : index
    %c0_23 = arith.constant 0 : index
    %c0_24 = arith.constant 0 : index
    %50 = vector.load %arg6[%c0_21, %c0_22, %c0_23, %c0_24] : memref<1x16x16x128xf32, #tpu.memory_space<vmem>>, vector<1x16x16x128xf32>
    tpu.vector_store %arg6[%c0_21, %c0_22, %c0_23, %c0_24], %49 {strides = array<i32>} : memref<1x16x16x128xf32, #tpu.memory_space<vmem>>, vector<1x16x16x128xf32>,
    return
  }
  func.func @transform_0(%arg0: i32) -> (i32, i32, i32, i32) {
    %c0_i32 = arith.constant 0 : i32
    %c0_i32_0 = arith.constant 0 : i32
    %c0_i32_1 = arith.constant 0 : i32
    %c0_i32_2 = arith.constant 0 : i32
    return %arg0, %c0_i32, %c0_i32_0, %c0_i32_1 : i32, i32, i32, i32
  }
  func.func @transform_1(%arg0: i32) -> (i32, i32) {
    %c0_i32 = arith.constant 0 : i32
    %c0_i32_0 = arith.constant 0 : i32
    %c0_i32_1 = arith.constant 0 : i32
    return %c0_i32, %c0_i32_0 : i32, i32
  }
  func.func @transform_2(%arg0: i32) -> (i32, i32) {
    %c0_i32 = arith.constant 0 : i32
    %c0_i32_0 = arith.constant 0 : i32
    %c0_i32_1 = arith.constant 0 : i32
    return %c0_i32, %c0_i32_0 : i32, i32
  }
  func.func @transform_3(%arg0: i32) -> (i32, i32, i32) {
    %c0_i32 = arith.constant 0 : i32
    %c0_i32_0 = arith.constant 0 : i32
    %c0_i32_1 = arith.constant 0 : i32
    %c0_i32_2 = arith.constant 0 : i32
    return %c0_i32, %c0_i32_0, %c0_i32_1 : i32, i32, i32
  }
  func.func @transform_4(%arg0: i32) -> (i32, i32) {
    %c0_i32 = arith.constant 0 : i32
    %c0_i32_0 = arith.constant 0 : i32
    %c0_i32_1 = arith.constant 0 : i32
    return %c0_i32, %c0_i32_0 : i32, i32
  }
  func.func @transform_5(%arg0: i32) -> (i32, i32, i32, i32) {
    %c0_i32 = arith.constant 0 : i32
    %c0_i32_0 = arith.constant 0 : i32
    %c0_i32_1 = arith.constant 0 : i32
    %c0_i32_2 = arith.constant 0 : i32
    return %arg0, %c0_i32, %c0_i32_0, %c0_i32_1 : i32, i32, i32, i32
  }
}

</mosaic_0001>

<bundles_post_ra>
// kernel: tpu_custom_call.1
= control target key start
LH: loop header
LB: loop body
LE: loop exit
PB: predicated region body
PF: predicated region fallthrough
CT: control target
= control target key end

     0   :  { %10 = vsyncpa [#allocation3], 0  ;;  %s4589_s0 = inlined_call_operand.hbm [shape: f32[2,16,16,128], index: 0, kind: input, shape index: {}]   ;;  %s4590_s1 = inlined_call_operand.hbm [shape: bf16[128,128], index: 1, kind: input, shape index: {}]   ;;  %s4591_s2 = inlined_call_operand.vmem [shape: f32[1,128], index: 2, kind: input, shape index: {}]   ;;  %s4592_s3 = inlined_call_operand.hbm [shape: bf16[3,384,128], index: 3, kind: input, shape index: {}]   ;;  %s4593_s4 = inlined_call_operand.vmem [shape: f32[1,128], index: 4, kind: input, shape index: {}]   ;;  %s4594_s5 = inlined_call_operand.hbm [shape: f32[2,16,16,128], index: 5, kind: output, shape index: {}]  }
   0x1   :  { %12 = vsyncpa [#allocation3 + $0x1], 0 }
   0x2   :  { %13 = vsyncpa [#allocation6], 0 }
   0x3   :  { %14 = vsyncpa [#allocation4], 0 }
   0x4   :  { %16 = vsyncpa [#allocation4 + $0x1], 0  ;;  %s3606_s18 = smov 0   ;;  %s3608_s19 = smov 0  }
   0x5   :  { %s3610_s20 = smov 0   ;;  %s3612_s21 = smov 0  }
   0x6 LB: > { %s3627_s22 = sadd.s32 4294967295, %s3562_s21   ;;  %s2531_s23 = sadd.s32 4294967294, %s3562_s21   ;;  %s3562_s21 = sphi %s3612_s21, %s4616_s21   ;;  %s3558_s20 = sphi %s3610_s20, %s4615_s20   ;;  %s3554_s19 = sphi %s3608_s19, %s4614_s19   ;;  %s3550_s18 = sphi %s3606_s18, %s4613_s18  }
   0x7   : > { %p42_p0 = scmp.ne.s32.totalorder %s3554_s19, %s3550_s18  ;;  %p4595_p1 = scmp.eq.s32.totalorder %s3627_s22, 0 }
   0x8   : > { %p156_p3 = scmp.eq.s32.totalorder %s2531_s23, 1  ;;  %p2532_p5 = scmp.ge.s32.totalorder %s3562_s21, 1 }
   0x9   : > { %p3636_p4 = por %p4595_p1, %p42_p0  ;;  %p163_p7 = scmp.lt.s32.totalorder %s3562_s21, 3 }
   0xa   : > { %p3641_p6 = por %p156_p3, %p42_p0  ;;  %s3564_s27 = smov [#allocation5]  }
   0xb   : > { %s4599_s24 = scalar_select %p3636_p4, 1, 0 }
   0xc   : > { %s4600_s25 = scalar_select %p3641_p6, 1, 0 }
   0xd   : > { %p3646_p8 = pnand %p2532_p5, %p163_p7  ;;  %s175_s28 = sshll.u32 %s3564_s27, 4  ;;  %s176_s28 = int_to_ptr.vmem [resolvable:$true] %s175_s28 }
   0xe   : > { %s3565_s30 = smov [#allocation7]   ;;  %s3425_s7 = scalar_lea.vmem %s176_s28, 1024 }
   0xf   : > { %s4601_s26 = scalar_select %p3646_p8, 1, 0 }
  0x10   : > { %p3271_p9 = pneg %p3646_p8  ;;  %s191_s6 = sshll.u32 %s3565_s30, 4  ;;  %s192_s6 = int_to_ptr.vmem [resolvable:$true] %s191_s6 }
  0x11   : > { %p3426_p13 = scmp.ne.s32.totalorder %s176_s28, %s3425_s7  ;;  %p3433_p5 = scmp.lt.s32.totalorder %s176_s28, %s176_s28 }
  0x12   : > { %p3655_p11 = pnand %p3271_p9, %p4595_p1  ;;  %p3434_p7 = scmp.lt.s32.totalorder %s3425_s7, %s3425_s7 }
  0x14   : > { %p3416_p12 = pneg %p3655_p11  ;;  %p3435_p10 = por %p3434_p7, %p3433_p5 }
  0x16   : > { %p3428_p0 = pnand %p3426_p13, %p3416_p12 }
  0x18   : > { %p3429_p3 = pneg %p3428_p0 }
  0x1a   : > { %p3436_p9 = pnand %p3435_p10, %p3429_p3 }
  0x1c   : > { %3439 = shalt.err (!%p3436_p9)
}
  0x1d   : > { %s3566_s8 = smov 64   ;;  %s3567_s9 = smov 4  }
  0x1e   : > { %3274 = dma.hbm_to_vmem [thread:$0]  (!%p3655_p11), %s4590_s1, 1024, %s176_s28, [#allocation6], %s3566_s8, %s3566_s8, %s3567_s9  }
  0x1f   : > { %s3451_s12 = scalar_lea.vmem %s192_s6, 9216  ;;  %p3459_p2 = scmp.lt.s32.totalorder %s192_s6, %s192_s6 }
  0x20   : > { %p3452_p1 = scmp.ne.s32.totalorder %s192_s6, %s3451_s12  ;;  %p3460_p6 = scmp.lt.s32.totalorder %s3451_s12, %s3451_s12 }
  0x22   : > { %p3454_p13 = pnand %p3452_p1, %p3416_p12  ;;  %p3461_p5 = por %p3460_p6, %p3459_p2 }
  0x24   : > { %p3455_p0 = pneg %p3454_p13 }
  0x26   : > { %p3462_p10 = pnand %p3461_p5, %p3455_p0 }
  0x28   : > { %3465 = shalt.err (!%p3462_p10)
}
  0x29   : > { %3277 = dma.hbm_to_vmem [thread:$0]  (!%p3655_p11), %s4592_s3, 9216, %s192_s6, [#allocation6], %s3566_s8, %s3566_s8, %s3567_s9  }
  0x2a   : > { %s3678_s15 = sadd.s32 1, %s3562_s21   ;;  %s29_s16 = sadd.s32 1, %s3558_s20 }
  0x2b   : > { %s26_s17 = ssub.s32 %s3562_s21, %s3678_s15  ;;  %p36_p1 = scmp.ne.s32.totalorder %s3558_s20, %s3554_s19 }
  0x2c   : > { %p27_p2 = scmp.eq.s32.totalorder %s26_s17, 0  ;;  %p37_p6 = scmp.eq.s32.totalorder %s3562_s21, 0 }
  0x2d   : > { %p4603_p12 = scmp.eq.s32.totalorder %s3627_s22, 1  ;;  %p3288_p7 = scmp.lt.s32.totalorder %s3562_s21, 2 }
  0x2e   : > { %s3694_s27 = scalar_select %p27_p2, %s3558_s20, %s29_s16  }
  0x2f   : > { %p3688_p3 = por %p4603_p12, %p36_p1  ;;  %p38_p9 = por %p37_p6, %p36_p1 }
  0x30   : > { %s208_s28 = sand.u32 1, %s3558_s20   ;;  %s2633_s30 = sshll.u32 %s3562_s21, 12 }
  0x31   : > { %s4604_s23 = scalar_select %p3688_p3, 1, 0 }
  0x32   : > { %s2536_s29 = sshll.u32 %s208_s28, 8  ;;  %s3701_s8 = scalar_lea.hbm %s4589_s0, %s2633_s30 }
  0x33   : > { %s212_s9 = scalar_lea.vmem [#allocation2], %s2536_s29  ;;  %p3705_p11 = pnand %p3288_p7, %p38_p9 }
  0x34   : > { %s219_s10 = sshll.u32 %s212_s9, 4  ;;  %s3709_s12 = scalar_lea.sflag [#allocation3], %s208_s28  ;;  %s3703_s10 = int_to_ptr.vmem [resolvable:$true] %s219_s10 }
  0x35   : > { %s3466_s13 = scalar_lea.hbm %s3701_s8, 4096  ;;  %p3468_p0 = pneg %p3705_p11 }
  0x36   : > { %p3467_p13 = scmp.ne.s32.totalorder %s3701_s8, %s3466_s13  ;;  %s3471_s17 = scalar_lea.hbm %s4589_s0, 8192 }
  0x37   : > { %p3472_p1 = scmp.lt.s32.totalorder %s3701_s8, %s4589_s0  ;;  %p3473_p2 = scmp.lt.s32.totalorder %s3471_s17, %s3466_s13 }
  0x38   : > { %p3469_p5 = pnand %p3468_p0, %p3467_p13 }
  0x39   : > { %p3474_p6 = por %p3473_p2, %p3472_p1 }
  0x3a   : > { %p3470_p10 = pneg %p3469_p5 }
  0x3c   : > { %p3475_p12 = pnand %p3474_p6, %p3470_p10 }
  0x3e   : > { %3478 = shalt.err (!%p3475_p12)
}
  0x3f   : > { %s3479_s28 = scalar_lea.vmem %s3703_s10, 4096  ;;  %s3568_s6 = smov [#allocation2]  }
  0x40   : > { %p3480_p7 = scmp.ne.s32.totalorder %s3703_s10, %s3479_s28  ;;  %s3484_s7 = sshll.u32 %s3568_s6, 4  ;;  %s3485_s7 = int_to_ptr.vmem [resolvable:$false] %s3484_s7 }
  0x41   : > { %s3486_s9 = scalar_lea.vmem %s3485_s7, 8192  ;;  %p3487_p5 = scmp.lt.s32.totalorder %s3703_s10, %s3485_s7 }
  0x42   : > { %p3482_p9 = pnand %p3480_p7, %p3468_p0  ;;  %p3488_p3 = scmp.lt.s32.totalorder %s3486_s9, %s3479_s28 }
  0x44   : > { %p3483_p13 = pneg %p3482_p9  ;;  %p3489_p4 = por %p3488_p3, %p3487_p5 }
  0x46   : > { %p3490_p8 = pnand %p3489_p4, %p3483_p13 }
  0x48   : > { %3493 = shalt.err (!%p3490_p8)
}
  0x49   : > { %s3569_s13 = smov 128   ;;  %s3570_s14 = smov 8  }
  0x4a   : > { %3281 = dma.hbm_to_vmem [thread:$0]  (!%p3705_p11), %s3701_s8, 4096, %s3703_s10, %s3709_s12, %s3569_s13, %s3569_s13, %s3570_s14  }
  0x4b   : > { %p4606_p0 = scmp.ne.s32.totalorder %s4601_s26, 0 }
  0x4c   : > { %s3733_s16 = sand.u32 (!%p4606_p0), 1, %s3554_s19   ;;  %p4607_p4 = scmp.ne.s32.totalorder (!%p4606_p0), %s4599_s24, 0 }
  0x4d   : > { %231 = sbr.rel (%p4606_p0) target bundleno = 859 (0x35b), region = 40  ;;  %s2540_s17 = sshll.u32 (!%p4606_p0), %s3733_s16, 8 }
  0x4e   : > { %s234_s29 = scalar_lea.sflag (!%p4606_p0), [#allocation3], %s3733_s16  ;;  %s3739_s30 = scalar_lea.vmem (!%p4606_p0), [#allocation2], %s2540_s17 }
  0x52   : > { %3537 = dma.done.wait (%p4607_p4), %s234_s29, 4096  }
  0x53   : > { %3539 = vsyncadd (%p4607_p4), %s234_s29, 4294963200  ;;  %p4608_p8 = scmp.eq.s32.totalorder %s3627_s22, 0 }
  0x55   : > { %3541 = dma.done.wait (%p4608_p8), [#allocation6], 10240   ;;  %p4609_p3 = pmov %p4608_p8 }
  0x56   : > { %v3334_v0 = vld [vmem:[#allocation5 + $0x38] sm:$0xff]   ;;  %v3335_v1 = vld [vmem:[#allocation5 + $0x30] sm:$0xff]   ;;  %v3336_v2 = vld [vmem:[#allocation5 + $0x28] sm:$0xff]   ;;  %s4400_s11 = scalar_lea.vmem [#allocation8], %s2540_s17  ;;  %s2634_s12 = sshll.u32 %s3627_s22, 12 }
  0x57   : > { %3543 = vsyncadd (%p4609_p3), [#allocation6], 4294957056  ;;  %3067 = vmatprep.subr.bf16.mxu0 %v3334_v0  ;;  %v3337_v3 = vld [vmem:[#allocation5 + $0x20] sm:$0xff]   ;;  %v274_v5 = vld [vmem:[%s3739_s30 + $0x8] sm:$0xff]  ;;  %s2439_s28 = sshll.u32 %s4400_s11, 4  ;;  %s4541_s9 = scalar_lea.hbm %s4594_s5, %s2634_s12  ;;  %s4543_s28 = int_to_ptr.vmem [resolvable:$true] %s2439_s28 }
  0x58   : > { %3068 = vmatpush3.bf16.msra.mxu0 %v3334_v0  ;;  %v273_v4 = vld [vmem:[%s3739_s30] sm:$0xff]  ;;  %v3338_v7 = vld [vmem:[#allocation5 + $0x18] sm:$0xff]   ;;  %v3339_v8 = vld [vmem:[#allocation5 + $0x10] sm:$0xff]   ;;  %s2426_s22 = scalar_lea.sflag [#allocation4], %s3733_s16  ;;  %s3494_s13 = scalar_lea.vmem %s4543_s28, 4096 }
  0x59   : > { %3069 = vmatprep.subr.bf16.mxu0 %v3335_v1  ;;  %v305_v6 = vpack.c.bf16 %v274_v5, %v273_v4  ;;  %v3340_v9 = vld [vmem:[#allocation5 + $0x8] sm:$0xff]   ;;  %v3342_v10 = vld [vmem:[#allocation7 + $0x78] sm:$0xff]   ;;  %v3344_v12 = vld [vmem:[#allocation7 + $0x70] sm:$0xff]   ;;  %p3495_p11 = scmp.ne.s32.totalorder %s4543_s28, %s3494_s13  ;;  %p4610_p10 = scmp.ne.s32.totalorder %s4604_s23, 0 }
  0x5a   : > { %v3343_v11 = vld [vmem:[#allocation7 + $0x38] sm:$0xff]   ;;  %2659 = vmatprep.subr.bf16.mxu1 %v3342_v10  ;;  %v3345_v13 = vld [vmem:[#allocation7 + $0x30] sm:$0xff]   ;;  %v3346_v14 = vld [vmem:[#allocation7 + $0x68] sm:$0xff]   ;;  %s3573_s14 = smov [#allocation8]  }
  0x5b   : > { %3083 = vmatprep.mubr.bf16.mxu0 %v305_v6  ;;  %2660 = vmatpush3.bf16.msra.mxu1 %v3343_v11  ;;  %v3341_v15 = vld [vmem:[#allocation5] sm:$0xff]   ;;  %v275_v16 = vld [vmem:[%s3739_s30 + $0x10] sm:$0xff]  ;;  %v276_v17 = vld [vmem:[%s3739_s30 + $0x18] sm:$0xff]  ;;  %p3496_p1 = pnand %p3495_p11, %p4610_p10  ;;  %s3498_s17 = sshll.u32 %s3573_s14, 4  ;;  %s3499_s17 = int_to_ptr.vmem [resolvable:$false] %s3498_s17 }
  0x5c   : > { %3070 = vmatpush3.bf16.msra.mxu0 %v3335_v1  ;;  %2661 = vmatprep.subr.bf16.mxu1 %v3344_v12  ;;  %v277_v18 = vld [vmem:[%s3739_s30 + $0x20] sm:$0xff]  ;;  %v278_v19 = vld [vmem:[%s3739_s30 + $0x28] sm:$0xff]  ;;  %v3347_v22 = vld [vmem:[#allocation7 + $0xb8] sm:$0xff]   ;;  %v306_v23 = vpack.c.bf16 %v276_v17, %v275_v16  ;;  %s3500_s29 = scalar_lea.vmem %s3499_s17, 8192  ;;  %p3501_p6 = scmp.lt.s32.totalorder %s4543_s28, %s3499_s17 }
  0x5d   : > { %3071 = vmatprep.subr.bf16.mxu0 %v3336_v2  ;;  %v3348_v20 = vld [vmem:[#allocation7 + $0x28] sm:$0xff]   ;;  %v3349_v21 = vld [vmem:[#allocation7 + $0x60] sm:$0xff]   ;;  %v3350_v24 = vld [vmem:[#allocation7 + $0xb0] sm:$0xff]   ;;  %v307_v26 = vpack.c.bf16 %v278_v19, %v277_v18  ;;  %p3497_p2 = pneg %p3496_p1  ;;  %p3502_p12 = scmp.lt.s32.totalorder %s3500_s29, %s3494_s13 }
  0x5e   : > { %v3351_v25 = vld [vmem:[#allocation7 + $0x20] sm:$0xff]   ;;  %v3352_v27 = vld [vmem:[#allocation7 + $0x58] sm:$0xff]   ;;  %v279_v29 = vld [vmem:[%s3739_s30 + $0x30] sm:$0xff] }
  0x5f   : > { %2662 = vmatpush3.bf16.msra.mxu1 %v3345_v13  ;;  %v3354_v28 = vld [vmem:[#allocation7 + $0x18] sm:$0xff]   ;;  %v3355_v31 = vld [vmem:[#allocation7 + $0x50] sm:$0xff]   ;;  %v281_v32 = vld [vmem:[%s3739_s30 + $0x40] sm:$0xff]  ;;  %p3503_p7 = por %p3502_p12, %p3501_p6 }
  0x60   : > { %3072 = vmatpush3.bf16.msra.mxu0 %v3336_v2  ;;  %2663 = vmatprep.subr.bf16.mxu1 %v3346_v14  ;;  %v280_v30 = vld [vmem:[%s3739_s30 + $0x38] sm:$0xff]  ;;  %v282_v33 = vld [vmem:[%s3739_s30 + $0x48] sm:$0xff]  ;;  %v3356_v36 = vld [vmem:[#allocation7 + $0xa0] sm:$0xff]  }
  0x61   : > { %3073 = vmatprep.subr.bf16.mxu0 %v3337_v3  ;;  %v3353_v34 = vld [vmem:[#allocation7 + $0xa8] sm:$0xff]   ;;  %v308_v35 = vpack.c.bf16 %v280_v30, %v279_v29  ;;  %v309_v37 = vpack.c.bf16 %v282_v33, %v281_v32  ;;  %v283_v38 = vld [vmem:[%s3739_s30 + $0x50] sm:$0xff]  ;;  %v284_v39 = vld [vmem:[%s3739_s30 + $0x58] sm:$0xff]  ;;  %p3504_p9 = pnand %p3503_p7, %p3497_p2 }
  0x62   : > { %v285_v40 = vld [vmem:[%s3739_s30 + $0x60] sm:$0xff]  ;;  %v286_v41 = vld [vmem:[%s3739_s30 + $0x68] sm:$0xff]  ;;  %v310_v42 = vpack.c.bf16 %v284_v39, %v283_v38  ;;  %v287_v44 = vld [vmem:[%s3739_s30 + $0x70] sm:$0xff] }
  0x63   : > { %2664 = vmatpush3.bf16.msra.mxu1 %v3348_v20  ;;  %v311_v43 = vpack.c.bf16 %v286_v41, %v285_v40  ;;  %v288_v45 = vld [vmem:[%s3739_s30 + $0x78] sm:$0xff]  ;;  %v289_v46 = vld [vmem:[%s3739_s30 + $0x80] sm:$0xff]  ;;  %v290_v47 = vld [vmem:[%s3739_s30 + $0x88] sm:$0xff] }
  0x64   : > { %3074 = vmatpush3.bf16.msra.mxu0 %v3337_v3  ;;  %2665 = vmatprep.subr.bf16.mxu1 %v3349_v21  ;;  %v312_v48 = vpack.c.bf16 %v288_v45, %v287_v44  ;;  %v313_v49 = vpack.c.bf16 %v290_v47, %v289_v46  ;;  %v291_v50 = vld [vmem:[%s3739_s30 + $0x90] sm:$0xff]  ;;  %v292_v51 = vld [vmem:[%s3739_s30 + $0x98] sm:$0xff]  ;;  %v293_v52 = vld [vmem:[%s3739_s30 + $0xa0] sm:$0xff] }
  0x65   : > { %3075 = vmatprep.subr.bf16.mxu0 %v3338_v7  ;;  %v294_v53 = vld [vmem:[%s3739_s30 + $0xa8] sm:$0xff]  ;;  %v314_v54 = vpack.c.bf16 %v292_v51, %v291_v50  ;;  %v295_v56 = vld [vmem:[%s3739_s30 + $0xb0] sm:$0xff]  ;;  %v296_v57 = vld [vmem:[%s3739_s30 + $0xb8] sm:$0xff] }
  0x66   : > { %v315_v55 = vpack.c.bf16 %v294_v53, %v293_v52  ;;  %v297_v58 = vld [vmem:[%s3739_s30 + $0xc0] sm:$0xff]  ;;  %v298_v59 = vld [vmem:[%s3739_s30 + $0xc8] sm:$0xff]  ;;  %v316_v60 = vpack.c.bf16 %v296_v57, %v295_v56  ;;  %v299_v62 = vld [vmem:[%s3739_s30 + $0xd0] sm:$0xff] }
  0x67   : > { %2666 = vmatpush3.bf16.msra.mxu1 %v3351_v25  ;;  %v317_v61 = vpack.c.bf16 %v298_v59, %v297_v58  ;;  %v300_v63 = vld [vmem:[%s3739_s30 + $0xd8] sm:$0xff]  ;;  %v301_v0 = vld [vmem:[%s3739_s30 + $0xe0] sm:$0xff]  ;;  %v302_v1 = vld [vmem:[%s3739_s30 + $0xe8] sm:$0xff] }
  0x68   : > { %3076 = vmatpush3.bf16.msra.mxu0 %v3338_v7  ;;  %2667 = vmatprep.subr.bf16.mxu1 %v3352_v27  ;;  %v318_v2 = vpack.c.bf16 %v300_v63, %v299_v62  ;;  %v319_v3 = vpack.c.bf16 %v302_v1, %v301_v0  ;;  %v303_v4 = vld [vmem:[%s3739_s30 + $0xf0] sm:$0xff]  ;;  %v304_v5 = vld [vmem:[%s3739_s30 + $0xf8] sm:$0xff]  ;;  %v3360_v10 = vld [vmem:[#allocation7 + $0x8] sm:$0xff]  }
  0x69   : > { %3077 = vmatprep.subr.bf16.mxu0 %v3339_v8  ;;  %v320_v6 = vpack.c.bf16 %v304_v5, %v303_v4  ;;  %v3357_v7 = vld [vmem:[#allocation7 + $0x10] sm:$0xff]   ;;  %v3361_v12 = vld [vmem:[#allocation7 + $0x40] sm:$0xff]   ;;  %v3364_v14 = vld [vmem:[#allocation7 + $0x88] sm:$0xff]  }
  0x6a   : > { %v3362_v11 = vld [vmem:[#allocation7 + $0x90] sm:$0xff]   ;;  %v3363_v13 = vld [vmem:[#allocation7] sm:$0xff]   ;;  %v3369_v17 = vld [vmem:[#allocation7 + $0x138] sm:$0xff]  }
  0x6b   : > { %2668 = vmatpush3.bf16.msra.mxu1 %v3354_v28  ;;  %v3366_v16 = vld [vmem:[#allocation7 + $0x80] sm:$0xff]   ;;  %v3368_v38 = vld [vmem:[#allocation7 + $0x168] sm:$0xff]   ;;  %v3370_v44 = vld [vmem:[#allocation7 + $0xf8] sm:$0xff]  }
  0x6c   : > { %3078 = vmatpush3.bf16.msra.mxu0 %v3339_v8  ;;  %2669 = vmatprep.subr.bf16.mxu1 %v3355_v31  ;;  %v3359_v8 = vld [vmem:[#allocation7 + $0x98] sm:$0xff]   ;;  %v3784_v19 = vld [vmem:[%s4591_s2] ss:$0 sm:$0xff]  ;;  %v3367_v31 = vld [vmem:[#allocation7 + $0x170] sm:$0xff]  }
  0x6d   : > { %3079 = vmatprep.subr.bf16.mxu0 %v3340_v9  ;;  %v3374_v45 = vld [vmem:[#allocation7 + $0x160] sm:$0xff]   ;;  %v3371_v46 = vld [vmem:[#allocation7 + $0x130] sm:$0xff]   ;;  %v3383_v53 = vld [vmem:[#allocation7 + $0x158] sm:$0xff]  }
  0x6e   : > { %v3372_v52 = vld [vmem:[#allocation7 + $0xf0] sm:$0xff]   ;;  %v3376_v62 = vld [vmem:[#allocation7 + $0x120] sm:$0xff]   ;;  %v3388_v5 = vld [vmem:[#allocation7 + $0x148] sm:$0xff]  }
  0x6f   : > { %2670 = vmatpush3.bf16.msra.mxu1 %v3357_v7  ;;  %v3377_v4 = vld [vmem:[#allocation7 + $0xe0] sm:$0xff]   ;;  %v3378_v7 = vld [vmem:[#allocation7 + $0x118] sm:$0xff]  }
  0x70   : > { %3080 = vmatpush3.bf16.msra.mxu0 %v3340_v9  ;;  %v3358_v9 = vld [vmem:[#allocation7 + $0x48] sm:$0xff]  }
  0x71   : > { %3081 = vmatprep.subr.bf16.mxu0 %v3341_v15  ;;  %2671 = vmatprep.subr.bf16.mxu1 %v3358_v9 }
  0x73   : > { %2672 = vmatpush3.bf16.msra.mxu1 %v3360_v10 }
  0x74   : > { %3082 = vmatpush3.bf16.msra.mxu0 %v3341_v15  ;;  %2673 = vmatprep.subr.bf16.mxu1 %v3361_v12  ;;  %v3365_v15 = vld [vmem:[#allocation7 + $0x178] sm:$0xff]  }
  0x75   : > { %3115 = vmatprep.subr.bf16.mxu0 %v3347_v22  ;;  %v3379_v12 = vld [vmem:[#allocation7 + $0xd8] sm:$0xff]  }
  0x77   : > { %3084 = vmatmul.mubr.bf16.vlgmr.msra.gmra.mxu0 %v306_v23  ;;  %2674 = vmatpush3.bf16.msra.mxu1 %v3363_v13  ;;  %v3389_v13 = vld [vmem:[#allocation7 + $0x140] sm:$0xff]  }
  0x78   : > { %3087 = vmatprep.mubr.bf16.mxu0 %v307_v26  ;;  %3116 = vmatpush3.bf16.msra.mxu0 %v3347_v22 }
  0x79   : > { %3117 = vmatprep.subr.bf16.mxu0 %v3350_v24  ;;  %3163 = vmatprep.subr.bf16.mxu1 %v3365_v15 }
  0x7c   : > { %3118 = vmatpush3.bf16.msra.mxu0 %v3350_v24 }
  0x7d   : > { %3119 = vmatprep.subr.bf16.mxu0 %v3353_v34 }
  0x7f   : > { %3088 = vmatmul.mubr.bf16.gmra.mxu0 %v308_v35 }
  0x80   : > { %3091 = vmatprep.mubr.bf16.mxu0 %v309_v37  ;;  %3120 = vmatpush3.bf16.msra.mxu0 %v3353_v34  ;;  %v3571_v34 = vmov 0  }
  0x81   : > { %3121 = vmatprep.subr.bf16.mxu0 %v3356_v36 }
  0x84   : > { %3122 = vmatpush3.bf16.msra.mxu0 %v3356_v36 }
  0x85   : > { %3123 = vmatprep.subr.bf16.mxu0 %v3359_v8 }
  0x87   : > { %3092 = vmatmul.mubr.bf16.gmra.mxu0 %v310_v42 }
  0x88   : > { %3095 = vmatprep.mubr.bf16.mxu0 %v311_v43  ;;  %3124 = vmatpush3.bf16.msra.mxu0 %v3359_v8 }
  0x89   : > { %3125 = vmatprep.subr.bf16.mxu0 %v3362_v11 }
  0x8c   : > { %3126 = vmatpush3.bf16.msra.mxu0 %v3362_v11 }
  0x8d   : > { %3127 = vmatprep.subr.bf16.mxu0 %v3364_v14 }
  0x8f   : > { %3096 = vmatmul.mubr.bf16.gmra.mxu0 %v312_v48 }
  0x90   : > { %3099 = vmatprep.mubr.bf16.mxu0 %v313_v49  ;;  %3128 = vmatpush3.bf16.msra.mxu0 %v3364_v14  ;;  %v3380_v14 = vld [vmem:[#allocation7 + $0x110] sm:$0xff]  }
  0x91   : > { %3129 = vmatprep.subr.bf16.mxu0 %v3366_v16 }
  0x94   : > { %3130 = vmatpush3.bf16.msra.mxu0 %v3366_v16 }
  0x95   : > { %2795 = vmatprep.subr.bf16.mxu0 %v3369_v17 }
  0x97   : > { %3100 = vmatmul.mubr.bf16.gmra.mxu0 %v314_v54 }
  0x98   : > { %3103 = vmatprep.mubr.bf16.mxu0 %v315_v55  ;;  %v3373_v55 = vld [vmem:[#allocation7 + $0x128] sm:$0xff]  }
  0x9f   : > { %3104 = vmatmul.mubr.bf16.gmra.mxu0 %v316_v60  ;;  %v3375_v60 = vld [vmem:[#allocation7 + $0xe8] sm:$0xff]  }
  0xa0   : > { %3107 = vmatprep.mubr.bf16.mxu0 %v317_v61  ;;  %v3387_v61 = vld [vmem:[#allocation7 + $0x150] sm:$0xff]  }
  0xa7   : > { %3108 = vmatmul.mubr.bf16.gmra.mxu0 %v318_v2 }
  0xa8   : > { %3111 = vmatprep.mubr.bf16.mxu0 %v319_v3 }
  0xaf   : > { %3112 = vmatmul.mubr.bf16.gmra.mxu0 %v320_v6 }
 0x137   : > { %v3085_v18 = vpop.f32.mrf.mxu0 }
 0x138   : > { %v435_v22 = vadd.f32 %v3085_v18, %v3784_v19 }
 0x139   : > { %v426_v20 = vpop.f32.mrf.mxu0 }
 0x13a   : > { %v427_v25 = vadd.f32 %v3784_v19, %v426_v20 }
 0x13b   : > { %v3086_v21 = vpop.f32.mrf.mxu0 }
 0x13c   : > { %v438_v23 = vadd.f32 %v3086_v21, %v3784_v19  ;;  %v3381_v21 = vld [vmem:[#allocation7 + $0xd0] sm:$0xff]  }
 0x13d   : > { %v429_v24 = vpop.f32.mrf.mxu0 }
 0x13e   : > { %v3789_v26 = vpack.c.bf16 %v438_v23, %v435_v22  ;;  %v430_v27 = vadd.f32 %v3784_v19, %v429_v24  ;;  %v3390_v22 = vld [vmem:[#allocation7 + $0x1f8] sm:$0xff]   ;;  %v3382_v24 = vld [vmem:[#allocation7 + $0x108] sm:$0xff]  }
 0x13f   : > { %v3089_v28 = vpop.f32.mrf.mxu0 }
 0x140   : > { %v3792_v29 = vpack.c.bf16 %v430_v27, %v427_v25  ;;  %3131 = vmatprep.mubr.bf16.mxu0 %v3789_v26  ;;  %v451_v32 = vadd.f32 %v3089_v28, %v3784_v19 }
 0x141   : > { %v442_v30 = vpop.f32.mrf.mxu0 }
 0x142   : > { %796 = vmatprep.mubr.bf16.mxu1 %v3792_v29  ;;  %v443_v35 = vadd.f32 %v3784_v19, %v442_v30 }
 0x143   : > { %v3090_v33 = vpop.f32.mrf.mxu0  ;;  %797 = vmatmul.mubr.bf16.vlgmr.msra.gmra.mxu1 %v3571_v34 }
 0x144   : > { %v454_v36 = vadd.f32 %v3090_v33, %v3784_v19  ;;  %3164 = vmatpush3.bf16.msra.mxu1 %v3365_v15  ;;  %804 = vmatprep.mubr.bf16.mxu1 %v3789_v26 }
 0x145   : > { %v445_v37 = vpop.f32.mrf.mxu0  ;;  %3165 = vmatprep.subr.bf16.mxu1 %v3367_v31 }
 0x146   : > { %v446_v39 = vadd.f32 %v3784_v19, %v445_v37  ;;  %v3802_v40 = vpack.c.bf16 %v454_v36, %v451_v32  ;;  %v3385_v32 = vld [vmem:[#allocation7 + $0x100] sm:$0xff]  }
 0x147   : > { %v3093_v41 = vpop.f32.mrf.mxu0 }
 0x148   : > { %v3804_v42 = vpack.c.bf16 %v446_v39, %v443_v35  ;;  %3166 = vmatpush3.bf16.msra.mxu1 %v3367_v31  ;;  %v467_v47 = vadd.f32 %v3093_v41, %v3784_v19  ;;  %v3384_v31 = vld [vmem:[#allocation7 + $0xc8] sm:$0xff]   ;;  %v3386_v39 = vld [vmem:[#allocation7 + $0xc0] sm:$0xff]  }
 0x149   : > { %v458_v43 = vpop.f32.mrf.mxu0  ;;  %3167 = vmatprep.subr.bf16.mxu1 %v3368_v38 }
 0x14a   : > { %3132 = vmatmul.mubr.bf16.vlgmr.msra.gmra.mxu0 %v3804_v42  ;;  %v459_v49 = vadd.f32 %v3784_v19, %v458_v43  ;;  %v3392_v43 = vld [vmem:[#allocation7 + $0x238] sm:$0xff]  }
 0x14b   : > { %v3094_v48 = vpop.f32.mrf.mxu0  ;;  %805 = vmatmul.mubr.bf16.gmra.mxu1 %v3792_v29  ;;  %3135 = vmatprep.mubr.bf16.mxu0 %v3802_v40 }
 0x14c   : > { %v470_v50 = vadd.f32 %v3094_v48, %v3784_v19  ;;  %812 = vmatprep.mubr.bf16.mxu1 %v3804_v42  ;;  %3168 = vmatpush3.bf16.msra.mxu1 %v3368_v38 }
 0x14d   : > { %v461_v51 = vpop.f32.mrf.mxu0  ;;  %2796 = vmatpush3.bf16.msra.mxu0 %v3370_v44  ;;  %3169 = vmatprep.subr.bf16.mxu1 %v3374_v45 }
 0x14e   : > { %v462_v54 = vadd.f32 %v3784_v19, %v461_v51  ;;  %2797 = vmatprep.subr.bf16.mxu0 %v3371_v46  ;;  %v3814_v56 = vpack.c.bf16 %v470_v50, %v467_v47 }
 0x14f   : > { %v3097_v57 = vpop.f32.mrf.mxu0 }
 0x150   : > { %v3816_v58 = vpack.c.bf16 %v462_v54, %v459_v49  ;;  %3170 = vmatpush3.bf16.msra.mxu1 %v3374_v45  ;;  %v483_v63 = vadd.f32 %v3097_v57, %v3784_v19 }
 0x151   : > { %v474_v59 = vpop.f32.mrf.mxu0  ;;  %2798 = vmatpush3.bf16.msra.mxu0 %v3372_v52  ;;  %3171 = vmatprep.subr.bf16.mxu1 %v3383_v53 }
 0x152   : > { %3136 = vmatmul.mubr.bf16.gmra.mxu0 %v3816_v58  ;;  %2799 = vmatprep.subr.bf16.mxu0 %v3373_v55  ;;  %v475_v1 = vadd.f32 %v3784_v19, %v474_v59 }
 0x153   : > { %v3098_v0 = vpop.f32.mrf.mxu0  ;;  %813 = vmatmul.mubr.bf16.gmra.mxu1 %v3789_v26  ;;  %3139 = vmatprep.mubr.bf16.mxu0 %v3814_v56 }
 0x154   : > { %v486_v2 = vadd.f32 %v3098_v0, %v3784_v19  ;;  %820 = vmatprep.mubr.bf16.mxu1 %v3802_v40  ;;  %3172 = vmatpush3.bf16.msra.mxu1 %v3383_v53 }
 0x155   : > { %v477_v3 = vpop.f32.mrf.mxu0  ;;  %2800 = vmatpush3.bf16.msra.mxu0 %v3375_v60  ;;  %3173 = vmatprep.subr.bf16.mxu1 %v3387_v61 }
 0x156   : > { %v478_v6 = vadd.f32 %v3784_v19, %v477_v3  ;;  %2801 = vmatprep.subr.bf16.mxu0 %v3376_v62  ;;  %v3826_v8 = vpack.c.bf16 %v486_v2, %v483_v63 }
 0x157   : > { %v3101_v9 = vpop.f32.mrf.mxu0 }
 0x158   : > { %v3828_v10 = vpack.c.bf16 %v478_v6, %v475_v1  ;;  %3174 = vmatpush3.bf16.msra.mxu1 %v3387_v61  ;;  %v499_v15 = vadd.f32 %v3101_v9, %v3784_v19  ;;  %v3409_v6 = vld [vmem:[#allocation7 + $0x218] sm:$0xff]   ;;  %v3412_v9 = vld [vmem:[#allocation7 + $0x208] sm:$0xff]  }
 0x159   : > { %v490_v11 = vpop.f32.mrf.mxu0  ;;  %2802 = vmatpush3.bf16.msra.mxu0 %v3377_v4  ;;  %3175 = vmatprep.subr.bf16.mxu1 %v3388_v5  ;;  %v3402_v4 = vld [vmem:[#allocation7 + $0x228] sm:$0xff]  }
 0x15a   : > { %3140 = vmatmul.mubr.bf16.gmra.mxu0 %v3828_v10  ;;  %2803 = vmatprep.subr.bf16.mxu0 %v3378_v7  ;;  %v491_v17 = vadd.f32 %v3784_v19, %v490_v11  ;;  %v3411_v7 = vld [vmem:[#allocation7 + $0x210] sm:$0xff]   ;;  %v3413_v11 = vld [vmem:[#allocation7 + $0x200] sm:$0xff]  }
 0x15b   : > { %v3102_v16 = vpop.f32.mrf.mxu0  ;;  %821 = vmatmul.mubr.bf16.gmra.mxu1 %v3804_v42  ;;  %3143 = vmatprep.mubr.bf16.mxu0 %v3826_v8 }
 0x15c   : > { %v502_v18 = vadd.f32 %v3102_v16, %v3784_v19  ;;  %828 = vmatprep.mubr.bf16.mxu1 %v3816_v58  ;;  %3176 = vmatpush3.bf16.msra.mxu1 %v3388_v5  ;;  %v3407_v5 = vld [vmem:[#allocation7 + $0x220] sm:$0xff]   ;;  %v3396_v16 = vld [vmem:[#allocation7 + $0x1a8] sm:$0xff]  }
 0x15d   : > { %v493_v20 = vpop.f32.mrf.mxu0  ;;  %2804 = vmatpush3.bf16.msra.mxu0 %v3379_v12  ;;  %3177 = vmatprep.subr.bf16.mxu1 %v3389_v13  ;;  %v3391_v12 = vld [vmem:[#allocation7 + $0x1b8] sm:$0xff]  }
 0x15e   : > { %v494_v23 = vadd.f32 %v3784_v19, %v493_v20  ;;  %2805 = vmatprep.subr.bf16.mxu0 %v3380_v14  ;;  %v3838_v25 = vpack.c.bf16 %v502_v18, %v499_v15  ;;  %v3394_v14 = vld [vmem:[#allocation7 + $0x1b0] sm:$0xff]   ;;  %v3395_v15 = vld [vmem:[#allocation7 + $0x1e8] sm:$0xff]   ;;  %v3399_v18 = vld [vmem:[#allocation7 + $0x1a0] sm:$0xff]  }
 0x15f   : > { %v3105_v27 = vpop.f32.mrf.mxu0  ;;  %v3400_v20 = vld [vmem:[#allocation7 + $0x1d8] sm:$0xff]  }
 0x160   : > { %v3840_v28 = vpack.c.bf16 %v494_v23, %v491_v17  ;;  %3178 = vmatpush3.bf16.msra.mxu1 %v3389_v13  ;;  %v515_v33 = vadd.f32 %v3105_v27, %v3784_v19  ;;  %v3393_v13 = vld [vmem:[#allocation7 + $0x1f0] sm:$0xff]   ;;  %v3398_v17 = vld [vmem:[#allocation7 + $0x1e0] sm:$0xff]   ;;  %v3406_v27 = vld [vmem:[#allocation7 + $0x188] sm:$0xff]  }
 0x161   : > { %v506_v30 = vpop.f32.mrf.mxu0  ;;  %2806 = vmatpush3.bf16.msra.mxu0 %v3381_v21  ;;  %2931 = vmatprep.subr.bf16.mxu1 %v3390_v22  ;;  %v3401_v21 = vld [vmem:[#allocation7 + $0x198] sm:$0xff]   ;;  %v3403_v22 = vld [vmem:[#allocation7 + $0x1d0] sm:$0xff]  }
 0x162   : > { %3144 = vmatmul.mubr.bf16.gmra.mxu0 %v3840_v28  ;;  %2807 = vmatprep.subr.bf16.mxu0 %v3382_v24  ;;  %v507_v36 = vadd.f32 %v3784_v19, %v506_v30  ;;  %v3404_v23 = vld [vmem:[#allocation7 + $0x190] sm:$0xff]   ;;  %v3405_v24 = vld [vmem:[#allocation7 + $0x1c8] sm:$0xff]   ;;  %v3408_v30 = vld [vmem:[#allocation7 + $0x1c0] sm:$0xff]  }
 0x163   : > { %v3106_v35 = vpop.f32.mrf.mxu0  ;;  %829 = vmatmul.mubr.bf16.gmra.mxu1 %v3802_v40  ;;  %3147 = vmatprep.mubr.bf16.mxu0 %v3838_v25 }
 0x164   : > { %v518_v37 = vadd.f32 %v3106_v35, %v3784_v19  ;;  %836 = vmatprep.mubr.bf16.mxu1 %v3814_v56 }
 0x165   : > { %v509_v38 = vpop.f32.mrf.mxu0  ;;  %2808 = vmatpush3.bf16.msra.mxu0 %v3384_v31  ;;  %v3410_v31 = vld [vmem:[#allocation7 + $0x180] sm:$0xff]  }
 0x166   : > { %v510_v41 = vadd.f32 %v3784_v19, %v509_v38  ;;  %2809 = vmatprep.subr.bf16.mxu0 %v3385_v32  ;;  %v3850_v44 = vpack.c.bf16 %v518_v37, %v515_v33 }
 0x167   : > { %v3109_v45 = vpop.f32.mrf.mxu0 }
 0x168   : > { %v3852_v46 = vpack.c.bf16 %v510_v41, %v507_v36  ;;  %v531_v48 = vadd.f32 %v3109_v45, %v3784_v19  ;;  %v569_v41 = vlaneseq }
 0x169   : > { %v522_v47 = vpop.f32.mrf.mxu0  ;;  %2810 = vmatpush3.bf16.msra.mxu0 %v3386_v39 }
 0x16a   : > { %3148 = vmatmul.mubr.bf16.gmra.mxu0 %v3852_v46  ;;  %3211 = vmatprep.subr.bf16.mxu0 %v3392_v43  ;;  %v523_v50 = vadd.f32 %v3784_v19, %v522_v47 }
 0x16b   : > { %v3110_v49 = vpop.f32.mrf.mxu0  ;;  %837 = vmatmul.mubr.bf16.gmra.mxu1 %v3816_v58  ;;  %3151 = vmatprep.mubr.bf16.mxu0 %v3850_v44 }
 0x16c   : > { %v534_v51 = vadd.f32 %v3110_v49, %v3784_v19  ;;  %844 = vmatprep.mubr.bf16.mxu1 %v3828_v10 }
 0x16d   : > { %v525_v52 = vpop.f32.mrf.mxu0 }
 0x16e   : > { %v526_v53 = vadd.f32 %v3784_v19, %v525_v52  ;;  %v3862_v54 = vpack.c.bf16 %v534_v51, %v531_v48  ;;  %v3954_v51 = vshrl.u32 %v569_v41, 7 }
 0x16f   : > { %v3113_v55 = vpop.f32.mrf.mxu0 }
 0x170   : > { %v3864_v57 = vpack.c.bf16 %v526_v53, %v523_v50  ;;  %v547_v60 = vadd.f32 %v3113_v55, %v3784_v19  ;;  %vm2167_vm0 = vcmp.lt.s32.totalorder %v3954_v51, 1  ;;  %vm2123_vm1 = vcmp.ne.s32.totalorder %v3954_v51, 0 }
 0x171   : > { %v538_v59 = vpop.f32.mrf.mxu0  ;;  %vm2296_vm3 = vcmp.lt.s32.totalorder %v3954_v51, 7 }
 0x172   : > { %3152 = vmatmul.mubr.bf16.gmra.mxu0 %v3864_v57  ;;  %v539_v62 = vadd.f32 %v3784_v19, %v538_v59 }
 0x173   : > { %v3114_v61 = vpop.f32.mrf.mxu0  ;;  %845 = vmatmul.mubr.bf16.gmra.mxu1 %v3814_v56  ;;  %3155 = vmatprep.mubr.bf16.mxu0 %v3862_v54 }
 0x174   : > { %v550_v63 = vadd.f32 %v3114_v61, %v3784_v19  ;;  %852 = vmatprep.mubr.bf16.mxu1 %v3826_v8 }
 0x175   : > { %v541_v0 = vpop.f32.mrf.mxu0 }
 0x176   : > { %v542_v1 = vadd.f32 %v3784_v19, %v541_v0  ;;  %v3874_v2 = vpack.c.bf16 %v550_v63, %v547_v60  ;;  %v3397_v19 = vld [vmem:[#allocation7 + $0x230] sm:$0xff]  }
 0x178   : > { %v3876_v3 = vpack.c.bf16 %v542_v1, %v539_v62 }
 0x17a   : > { %3156 = vmatmul.mubr.bf16.gmra.mxu0 %v3876_v3 }
 0x17b   : > { %853 = vmatmul.mubr.bf16.gmra.mxu1 %v3828_v10  ;;  %3159 = vmatprep.mubr.bf16.mxu0 %v3874_v2 }
 0x17c   : > { %860 = vmatprep.mubr.bf16.mxu1 %v3840_v28 }
 0x182   : > { %3160 = vmatmul.mubr.bf16.gmra.mxu0 %v3571_v34 }
 0x183   : > { %861 = vmatmul.mubr.bf16.gmra.mxu1 %v3826_v8  ;;  %1318 = vmatprep.mubr.bf16.mxu0 %v3792_v29 }
 0x184   : > { %868 = vmatprep.mubr.bf16.mxu1 %v3838_v25 }
 0x18a   : > { %1319 = vmatmul.mubr.bf16.vlgmr.msra.gmra.mxu0 %v3571_v34 }
 0x18b   : > { %869 = vmatmul.mubr.bf16.gmra.mxu1 %v3840_v28  ;;  %1326 = vmatprep.mubr.bf16.mxu0 %v3789_v26 }
 0x18c   : > { %876 = vmatprep.mubr.bf16.mxu1 %v3852_v46  ;;  %3212 = vmatpush3.bf16.msra.mxu0 %v3392_v43 }
 0x18d   : > { %3213 = vmatprep.subr.bf16.mxu0 %v3397_v19 }
 0x190   : > { %3214 = vmatpush3.bf16.msra.mxu0 %v3397_v19 }
 0x191   : > { %3215 = vmatprep.subr.bf16.mxu0 %v3402_v4 }
 0x192   : > { %1327 = vmatmul.mubr.bf16.gmra.mxu0 %v3792_v29 }
 0x193   : > { %877 = vmatmul.mubr.bf16.gmra.mxu1 %v3838_v25  ;;  %1334 = vmatprep.mubr.bf16.mxu0 %v3804_v42 }
 0x194   : > { %884 = vmatprep.mubr.bf16.mxu1 %v3850_v44  ;;  %3216 = vmatpush3.bf16.msra.mxu0 %v3402_v4 }
 0x195   : > { %3217 = vmatprep.subr.bf16.mxu0 %v3407_v5 }
 0x198   : > { %3218 = vmatpush3.bf16.msra.mxu0 %v3407_v5 }
 0x199   : > { %3219 = vmatprep.subr.bf16.mxu0 %v3409_v6 }
 0x19a   : > { %1335 = vmatmul.mubr.bf16.gmra.mxu0 %v3789_v26 }
 0x19b   : > { %885 = vmatmul.mubr.bf16.gmra.mxu1 %v3852_v46  ;;  %1342 = vmatprep.mubr.bf16.mxu0 %v3802_v40 }
 0x19c   : > { %892 = vmatprep.mubr.bf16.mxu1 %v3864_v57  ;;  %3220 = vmatpush3.bf16.msra.mxu0 %v3409_v6 }
 0x19d   : > { %3221 = vmatprep.subr.bf16.mxu0 %v3411_v7 }
 0x1a0   : > { %3222 = vmatpush3.bf16.msra.mxu0 %v3411_v7 }
 0x1a1   : > { %3223 = vmatprep.subr.bf16.mxu0 %v3412_v9 }
 0x1a2   : > { %1343 = vmatmul.mubr.bf16.gmra.mxu0 %v3804_v42 }
 0x1a3   : > { %893 = vmatmul.mubr.bf16.gmra.mxu1 %v3850_v44  ;;  %1350 = vmatprep.mubr.bf16.mxu0 %v3816_v58 }
 0x1a4   : > { %900 = vmatprep.mubr.bf16.mxu1 %v3862_v54  ;;  %3224 = vmatpush3.bf16.msra.mxu0 %v3412_v9 }
 0x1a5   : > { %3225 = vmatprep.subr.bf16.mxu0 %v3413_v11 }
 0x1a8   : > { %3226 = vmatpush3.bf16.msra.mxu0 %v3413_v11 }
 0x1aa   : > { %1351 = vmatmul.mubr.bf16.gmra.mxu0 %v3802_v40 }
 0x1ab   : > { %901 = vmatmul.mubr.bf16.gmra.mxu1 %v3864_v57  ;;  %1358 = vmatprep.mubr.bf16.mxu0 %v3814_v56 }
 0x1ac   : > { %908 = vmatprep.mubr.bf16.mxu1 %v3876_v3 }
 0x1b2   : > { %1359 = vmatmul.mubr.bf16.gmra.mxu0 %v3816_v58 }
 0x1b3   : > { %909 = vmatmul.mubr.bf16.gmra.mxu1 %v3862_v54  ;;  %1366 = vmatprep.mubr.bf16.mxu0 %v3828_v10 }
 0x1b4   : > { %916 = vmatprep.mubr.bf16.mxu1 %v3874_v2 }
 0x1ba   : > { %1367 = vmatmul.mubr.bf16.gmra.mxu0 %v3814_v56 }
 0x1bb   : > { %917 = vmatmul.mubr.bf16.gmra.mxu1 %v3876_v3  ;;  %1374 = vmatprep.mubr.bf16.mxu0 %v3826_v8 }
 0x1bc   : > { %3179 = vmatprep.mubr.bf16.mxu1 %v3789_v26 }
 0x1c2   : > { %1375 = vmatmul.mubr.bf16.gmra.mxu0 %v3828_v10 }
 0x1c3   : > { %1382 = vmatprep.mubr.bf16.mxu0 %v3840_v28  ;;  %3180 = vmatmul.mubr.bf16.vlgmr.msra.gmra.mxu1 %v3804_v42 }
 0x1c4   : > { %2932 = vmatpush3.bf16.msra.mxu1 %v3391_v12  ;;  %3183 = vmatprep.mubr.bf16.mxu1 %v3802_v40 }
 0x1c5   : > { %2933 = vmatprep.subr.bf16.mxu1 %v3393_v13 }
 0x1c8   : > { %2934 = vmatpush3.bf16.msra.mxu1 %v3394_v14 }
 0x1c9   : > { %2935 = vmatprep.subr.bf16.mxu1 %v3395_v15 }
 0x1ca   : > { %1383 = vmatmul.mubr.bf16.gmra.mxu0 %v3826_v8 }
 0x1cb   : > { %1390 = vmatprep.mubr.bf16.mxu0 %v3838_v25  ;;  %3184 = vmatmul.mubr.bf16.gmra.mxu1 %v3816_v58 }
 0x1cc   : > { %3187 = vmatprep.mubr.bf16.mxu1 %v3814_v56  ;;  %2936 = vmatpush3.bf16.msra.mxu1 %v3396_v16 }
 0x1cd   : > { %2937 = vmatprep.subr.bf16.mxu1 %v3398_v17 }
 0x1d0   : > { %2938 = vmatpush3.bf16.msra.mxu1 %v3399_v18 }
 0x1d1   : > { %2939 = vmatprep.subr.bf16.mxu1 %v3400_v20 }
 0x1d2   : > { %1391 = vmatmul.mubr.bf16.gmra.mxu0 %v3840_v28 }
 0x1d3   : > { %1398 = vmatprep.mubr.bf16.mxu0 %v3852_v46  ;;  %3188 = vmatmul.mubr.bf16.gmra.mxu1 %v3828_v10 }
 0x1d4   : > { %3191 = vmatprep.mubr.bf16.mxu1 %v3826_v8  ;;  %2940 = vmatpush3.bf16.msra.mxu1 %v3401_v21 }
 0x1d5   : > { %2941 = vmatprep.subr.bf16.mxu1 %v3403_v22 }
 0x1d8   : > { %2942 = vmatpush3.bf16.msra.mxu1 %v3404_v23 }
 0x1d9   : > { %2943 = vmatprep.subr.bf16.mxu1 %v3405_v24 }
 0x1da   : > { %1399 = vmatmul.mubr.bf16.gmra.mxu0 %v3838_v25 }
 0x1db   : > { %1406 = vmatprep.mubr.bf16.mxu0 %v3850_v44  ;;  %3192 = vmatmul.mubr.bf16.gmra.mxu1 %v3840_v28 }
 0x1dc   : > { %3195 = vmatprep.mubr.bf16.mxu1 %v3838_v25  ;;  %2944 = vmatpush3.bf16.msra.mxu1 %v3406_v27 }
 0x1dd   : > { %2945 = vmatprep.subr.bf16.mxu1 %v3408_v30 }
 0x1e0   : > { %2946 = vmatpush3.bf16.msra.mxu1 %v3410_v31 }
 0x1e2   : > { %1407 = vmatmul.mubr.bf16.gmra.mxu0 %v3852_v46 }
 0x1e3   : > { %1414 = vmatprep.mubr.bf16.mxu0 %v3864_v57  ;;  %3196 = vmatmul.mubr.bf16.gmra.mxu1 %v3852_v46 }
 0x1e4   : > { %3199 = vmatprep.mubr.bf16.mxu1 %v3850_v44 }
 0x1ea   : > { %1415 = vmatmul.mubr.bf16.gmra.mxu0 %v3850_v44 }
 0x1eb   : > { %1422 = vmatprep.mubr.bf16.mxu0 %v3862_v54  ;;  %3200 = vmatmul.mubr.bf16.gmra.mxu1 %v3864_v57 }
 0x1ec   : > { %3203 = vmatprep.mubr.bf16.mxu1 %v3862_v54 }
 0x1f2   : > { %1423 = vmatmul.mubr.bf16.gmra.mxu0 %v3864_v57 }
 0x1f3   : > { %1430 = vmatprep.mubr.bf16.mxu0 %v3876_v3  ;;  %3204 = vmatmul.mubr.bf16.gmra.mxu1 %v3876_v3 }
 0x1f4   : > { %3207 = vmatprep.mubr.bf16.mxu1 %v3874_v2 }
 0x1fa   : > { %1431 = vmatmul.mubr.bf16.gmra.mxu0 %v3862_v54 }
 0x1fb   : > { %1438 = vmatprep.mubr.bf16.mxu0 %v3874_v2  ;;  %3208 = vmatmul.mubr.bf16.gmra.mxu1 %v3571_v34 }
 0x1fc   : > { %1833 = vmatprep.mubr.bf16.mxu1 %v3792_v29 }
 0x202   : > { %1439 = vmatmul.mubr.bf16.gmra.mxu0 %v3876_v3 }
 0x203   : > { %v2675_v32 = vpop.f32.mrf.mxu1  ;;  %1834 = vmatmul.mubr.bf16.vlgmr.msra.gmra.mxu1 %v3571_v34  ;;  %3227 = vmatprep.mubr.bf16.mxu0 %v3789_v26 }
 0x204   : > { %1841 = vmatprep.mubr.bf16.mxu1 %v3789_v26 }
 0x205   : > { %v2676_v33 = vpop.f32.mrf.mxu1 }
 0x206   : > { %v2677_v35 = vadd.f32 %v2676_v33, %v2675_v32 }
 0x207   : > { %v2678_v36 = vpop.f32.mrf.mxu1 }
 0x209   : > { %v2679_v37 = vpop.f32.mrf.mxu1 }
 0x20a   : > { %v2680_v38 = vadd.f32 %v2679_v37, %v2678_v36  ;;  %v3133_v39 = vpop.f32.mrf.mxu0  ;;  %3228 = vmatmul.mubr.bf16.vlgmr.msra.gmra.mxu0 %v3804_v42 }
 0x20b   : > { %v2681_v43 = vpop.f32.mrf.mxu1  ;;  %1842 = vmatmul.mubr.bf16.gmra.mxu1 %v3792_v29  ;;  %3231 = vmatprep.mubr.bf16.mxu0 %v3802_v40 }
 0x20c   : > { %v959_v45 = vpop.f32.mrf.mxu0  ;;  %1849 = vmatprep.mubr.bf16.mxu1 %v3804_v42 }
 0x20d   : > { %v960_v47 = vadd.f32 %v2677_v35, %v959_v45  ;;  %v2682_v48 = vpop.f32.mrf.mxu1 }
 0x20e   : > { %v2683_v49 = vadd.f32 %v2682_v48, %v2681_v43  ;;  %v3134_v50 = vpop.f32.mrf.mxu0 }
 0x20f   : > { %v2684_v52 = vpop.f32.mrf.mxu1  ;;  %v2135_v29 = vrot.slane %v960_v47, 7 }
 0x210   : > { %v968_v53 = vadd.f32 %v3133_v39, %v2683_v49  ;;  %v962_v55 = vpop.f32.mrf.mxu0 }
 0x211   : > { %v963_v59 = vadd.f32 %v2680_v38, %v962_v55  ;;  %v2685_v60 = vpop.f32.mrf.mxu1 }
 0x212   : > { %v2686_v61 = vadd.f32 %v2685_v60, %v2684_v52  ;;  %v3137_v62 = vpop.f32.mrf.mxu0  ;;  %3232 = vmatmul.mubr.bf16.gmra.mxu0 %v3816_v58  ;;  %v2136_v7 = vrot.slane %v968_v53, 7 }
 0x213   : > { %v2151_v63 = vrot.slane %v963_v59, 7  ;;  %v2687_v0 = vpop.f32.mrf.mxu1  ;;  %1850 = vmatmul.mubr.bf16.gmra.mxu1 %v3789_v26  ;;  %3235 = vmatprep.mubr.bf16.mxu0 %v3814_v56 }
 0x214   : > { %v971_v1 = vadd.f32 %v3134_v50, %v2686_v61  ;;  %v975_v19 = vpop.f32.mrf.mxu0  ;;  %1857 = vmatprep.mubr.bf16.mxu1 %v3802_v40 }
 0x215   : > { %v2688_v4 = vpop.f32.mrf.mxu1  ;;  %v3963_v5 = vsel %vm2167_vm0, %v2151_v63, %v2135_v29  ;;  %v3967_v6 = vsel %vm2167_vm0, %v2135_v29, %v2151_v63 }
 0x216   : > { %v2152_v9 = vrot.slane %v971_v1, 7  ;;  %v2689_v11 = vadd.f32 %v2688_v4, %v2687_v0  ;;  %v3138_v12 = vpop.f32.mrf.mxu0 }
 0x217   : > { %v2690_v26 = vpop.f32.mrf.mxu1 }
 0x218   : > { %v976_v13 = vadd.f32 %v2689_v11, %v975_v19  ;;  %v978_v14 = vpop.f32.mrf.mxu0  ;;  %v3971_v15 = vsel %vm2167_vm0, %v2152_v9, %v2136_v7  ;;  %v3975_v16 = vsel %vm2167_vm0, %v2136_v7, %v2152_v9 }
 0x219   : > { %v2691_v17 = vpop.f32.mrf.mxu1 }
 0x21a   : > { %v2692_v18 = vadd.f32 %v2691_v17, %v2690_v26  ;;  %v3141_v20 = vpop.f32.mrf.mxu0  ;;  %3236 = vmatmul.mubr.bf16.gmra.mxu0 %v3828_v10  ;;  %v2137_v27 = vrot.slane %v976_v13, 7 }
 0x21b   : > { %v2693_v21 = vpop.f32.mrf.mxu1  ;;  %1858 = vmatmul.mubr.bf16.gmra.mxu1 %v3804_v42  ;;  %3239 = vmatprep.mubr.bf16.mxu0 %v3826_v8 }
 0x21c   : > { %v979_v22 = vadd.f32 %v2692_v18, %v978_v14  ;;  %v991_v23 = vpop.f32.mrf.mxu0  ;;  %1865 = vmatprep.mubr.bf16.mxu1 %v3816_v58 }
 0x21d   : > { %v2694_v24 = vpop.f32.mrf.mxu1 }
 0x21e   : > { %v2153_v30 = vrot.slane %v979_v22, 7  ;;  %v2695_v31 = vadd.f32 %v2694_v24, %v2693_v21  ;;  %v3142_v32 = vpop.f32.mrf.mxu0 }
 0x21f   : > { %v2696_v33 = vpop.f32.mrf.mxu1 }
 0x220   : > { %v984_v35 = vadd.f32 %v3137_v62, %v2695_v31  ;;  %v994_v36 = vpop.f32.mrf.mxu0  ;;  %v3983_v37 = vsel %vm2167_vm0, %v2153_v30, %v2137_v27  ;;  %v3987_v42 = vsel %vm2167_vm0, %v2137_v27, %v2153_v30 }
 0x221   : > { %v2697_v38 = vpop.f32.mrf.mxu1 }
 0x222   : > { %v2698_v39 = vadd.f32 %v2697_v38, %v2696_v33  ;;  %v3989_v41 = vpop.f32.mrf.mxu0  ;;  %3240 = vmatmul.mubr.bf16.gmra.mxu0 %v3840_v28  ;;  %v2138_v49 = vrot.slane %v984_v35, 7 }
 0x223   : > { %v2699_v43 = vpop.f32.mrf.mxu1  ;;  %1866 = vmatmul.mubr.bf16.gmra.mxu1 %v3802_v40  ;;  %3243 = vmatprep.mubr.bf16.mxu0 %v3838_v25 }
 0x224   : > { %v987_v45 = vadd.f32 %v3138_v12, %v2698_v39  ;;  %v1007_v47 = vpop.f32.mrf.mxu0  ;;  %1873 = vmatprep.mubr.bf16.mxu1 %v3814_v56 }
 0x225   : > { %v2700_v48 = vpop.f32.mrf.mxu1 }
 0x226   : > { %v2154_v50 = vrot.slane %v987_v45, 7  ;;  %v2701_v52 = vadd.f32 %v2700_v48, %v2699_v43  ;;  %v3995_v53 = vpop.f32.mrf.mxu0 }
 0x227   : > { %v2702_v55 = vpop.f32.mrf.mxu1 }
 0x228   : > { %v992_v59 = vadd.f32 %v2701_v52, %v991_v23  ;;  %v1010_v60 = vpop.f32.mrf.mxu0  ;;  %v3999_v61 = vsel %vm2167_vm0, %v2154_v50, %v2138_v49  ;;  %v4003_v40 = vsel %vm2167_vm0, %v2138_v49, %v2154_v50 }
 0x229   : > { %v2703_v62 = vpop.f32.mrf.mxu1 }
 0x22a   : > { %v2704_v29 = vadd.f32 %v2703_v62, %v2702_v55  ;;  %v4005_v63 = vpop.f32.mrf.mxu0  ;;  %3244 = vmatmul.mubr.bf16.gmra.mxu0 %v3852_v46  ;;  %v2139_v7 = vrot.slane %v992_v59, 7 }
 0x22b   : > { %v2705_v0 = vpop.f32.mrf.mxu1  ;;  %1874 = vmatmul.mubr.bf16.gmra.mxu1 %v3816_v58  ;;  %3247 = vmatprep.mubr.bf16.mxu0 %v3850_v44 }
 0x22c   : > { %v995_v1 = vadd.f32 %v2704_v29, %v994_v36  ;;  %v4010_v19 = vpop.f32.mrf.mxu0  ;;  %1881 = vmatprep.mubr.bf16.mxu1 %v3828_v10 }
 0x22d   : > { %v2706_v4 = vpop.f32.mrf.mxu1 }
 0x22e   : > { %v2155_v9 = vrot.slane %v995_v1, 7  ;;  %v2707_v11 = vadd.f32 %v2706_v4, %v2705_v0  ;;  %v4013_v12 = vpop.f32.mrf.mxu0 }
 0x22f   : > { %v2708_v26 = vpop.f32.mrf.mxu1 }
 0x230   : > { %v1000_v13 = vadd.f32 %v3141_v20, %v2707_v11  ;;  %v4015_v14 = vpop.f32.mrf.mxu0  ;;  %v4019_v58 = vsel %vm2167_vm0, %v2155_v9, %v2139_v7  ;;  %v4023_v17 = vsel %vm2167_vm0, %v2139_v7, %v2155_v9 }
 0x231   : > { %v2709_v18 = vpop.f32.mrf.mxu1 }
 0x232   : > { %v2710_v21 = vadd.f32 %v2709_v18, %v2708_v26  ;;  %v4025_v22 = vpop.f32.mrf.mxu0  ;;  %3248 = vmatmul.mubr.bf16.gmra.mxu0 %v3864_v57  ;;  %v2140_v30 = vrot.slane %v1000_v13, 7 }
 0x233   : > { %v2711_v23 = vpop.f32.mrf.mxu1  ;;  %1882 = vmatmul.mubr.bf16.gmra.mxu1 %v3814_v56  ;;  %3251 = vmatprep.mubr.bf16.mxu0 %v3862_v54 }
 0x234   : > { %v1003_v20 = vadd.f32 %v3142_v32, %v2710_v21  ;;  %v4030_v24 = vpop.f32.mrf.mxu0  ;;  %1889 = vmatprep.mubr.bf16.mxu1 %v3826_v8 }
 0x235   : > { %v2712_v27 = vpop.f32.mrf.mxu1 }
 0x236   : > { %v2156_v31 = vrot.slane %v1003_v20, 7  ;;  %v2713_v33 = vadd.f32 %v2712_v27, %v2711_v23  ;;  %v4033_v35 = vpop.f32.mrf.mxu0 }
 0x237   : > { %v2714_v36 = vpop.f32.mrf.mxu1 }
 0x238   : > { %v1008_v38 = vadd.f32 %v2713_v33, %v1007_v47  ;;  %v4035_v39 = vpop.f32.mrf.mxu0  ;;  %v4039_v56 = vsel %vm2167_vm0, %v2156_v31, %v2140_v30  ;;  %v4043_v32 = vsel %vm2167_vm0, %v2140_v30, %v2156_v31 }
 0x239   : > { %v2715_v43 = vpop.f32.mrf.mxu1 }
 0x23a   : > { %v2716_v45 = vadd.f32 %v2715_v43, %v2714_v36  ;;  %v4045_v48 = vpop.f32.mrf.mxu0  ;;  %3252 = vmatmul.mubr.bf16.gmra.mxu0 %v3876_v3  ;;  %v2141_v55 = vrot.slane %v1008_v38, 7 }
 0x23b   : > { %v2717_v49 = vpop.f32.mrf.mxu1  ;;  %1890 = vmatmul.mubr.bf16.gmra.mxu1 %v3828_v10  ;;  %3255 = vmatprep.mubr.bf16.mxu0 %v3874_v2 }
 0x23c   : > { %v1011_v47 = vadd.f32 %v2716_v45, %v1010_v60  ;;  %v4050_v50 = vpop.f32.mrf.mxu0  ;;  %1897 = vmatprep.mubr.bf16.mxu1 %v3840_v28 }
 0x23d   : > { %v2718_v52 = vpop.f32.mrf.mxu1 }
 0x23e   : > { %v2157_v59 = vrot.slane %v1011_v47, 7  ;;  %v2719_v62 = vadd.f32 %v2718_v52, %v2717_v49  ;;  %v4053_v29 = vpop.f32.mrf.mxu0 }
 0x23f   : > { %v2720_v0 = vpop.f32.mrf.mxu1 }
 0x240   : > { %v1016_v1 = vadd.f32 %v3989_v41, %v2719_v62  ;;  %v4056_v4 = vpop.f32.mrf.mxu0  ;;  %v4060_v10 = vsel %vm2167_vm0, %v2157_v59, %v2141_v55  ;;  %v4064_v60 = vsel %vm2167_vm0, %v2141_v55, %v2157_v59 }
 0x241   : > { %v2721_v7 = vpop.f32.mrf.mxu1 }
 0x242   : > { %v2722_v9 = vadd.f32 %v2721_v7, %v2720_v0  ;;  %v4066_v11 = vpop.f32.mrf.mxu0  ;;  %3256 = vmatmul.mubr.bf16.gmra.mxu0 %v3571_v34  ;;  %v2142_v21 = vrot.slane %v1016_v1, 7 }
 0x243   : > { %v2723_v26 = vpop.f32.mrf.mxu1  ;;  %1898 = vmatmul.mubr.bf16.gmra.mxu1 %v3826_v8 }
 0x244   : > { %v1019_v41 = vadd.f32 %v3995_v53, %v2722_v9  ;;  %v4071_v13 = vpop.f32.mrf.mxu0  ;;  %1905 = vmatprep.mubr.bf16.mxu1 %v3838_v25 }
 0x245   : > { %v2724_v18 = vpop.f32.mrf.mxu1 }
 0x246   : > { %v2158_v23 = vrot.slane %v1019_v41, 7  ;;  %v2725_v20 = vadd.f32 %v2724_v18, %v2723_v26  ;;  %v4074_v27 = vpop.f32.mrf.mxu0 }
 0x247   : > { %v2726_v30 = vpop.f32.mrf.mxu1 }
 0x248   : > { %v1024_v31 = vadd.f32 %v2725_v20, %v4010_v19  ;;  %v4077_v33 = vpop.f32.mrf.mxu0  ;;  %v4081_v34 = vsel %vm2167_vm0, %v2158_v23, %v2142_v21  ;;  %v4085_v8 = vsel %vm2167_vm0, %v2142_v21, %v2158_v23 }
 0x249   : > { %v2727_v53 = vpop.f32.mrf.mxu1 }
 0x24a   : > { %v2728_v36 = vadd.f32 %v2727_v53, %v2726_v30  ;;  %v2811_v38 = vpop.f32.mrf.mxu0  ;;  %v2143_v52 = vrot.slane %v1024_v31, 7 }
 0x24b   : > { %v2729_v43 = vpop.f32.mrf.mxu1  ;;  %1906 = vmatmul.mubr.bf16.gmra.mxu1 %v3840_v28 }
 0x24c   : > { %v1027_v45 = vadd.f32 %v2728_v36, %v4015_v14  ;;  %v2812_v49 = vpop.f32.mrf.mxu0  ;;  %1913 = vmatprep.mubr.bf16.mxu1 %v3852_v46 }
 0x24d   : > { %v4090_v19 = vadd.f32 %v2812_v49, %v2811_v38  ;;  %v2730_v47 = vpop.f32.mrf.mxu1 }
 0x24e   : > { %v2159_v55 = vrot.slane %v1027_v45, 7  ;;  %v2731_v59 = vadd.f32 %v2730_v47, %v2729_v43  ;;  %v2814_v62 = vpop.f32.mrf.mxu0 }
 0x24f   : > { %v2732_v0 = vpop.f32.mrf.mxu1 }
 0x250   : > { %v1032_v1 = vadd.f32 %v4005_v63, %v2731_v59  ;;  %v2815_v7 = vpop.f32.mrf.mxu0  ;;  %v4095_v9 = vsel %vm2167_vm0, %v2159_v55, %v2143_v52  ;;  %v4099_v28 = vsel %vm2167_vm0, %v2143_v52, %v2159_v55 }
 0x251   : > { %v4101_v14 = vadd.f32 %v2815_v7, %v2814_v62  ;;  %v2733_v26 = vpop.f32.mrf.mxu1 }
 0x252   : > { %v2734_v41 = vadd.f32 %v2733_v26, %v2732_v0  ;;  %v2817_v18 = vpop.f32.mrf.mxu0  ;;  %v2144_v31 = vrot.slane %v1032_v1, 7 }
 0x253   : > { %v2735_v21 = vpop.f32.mrf.mxu1  ;;  %1914 = vmatmul.mubr.bf16.gmra.mxu1 %v3838_v25 }
 0x254   : > { %v1035_v23 = vadd.f32 %v4013_v12, %v2734_v41  ;;  %v2818_v63 = vpop.f32.mrf.mxu0  ;;  %1921 = vmatprep.mubr.bf16.mxu1 %v3850_v44 }
 0x255   : > { %v4106_v20 = vadd.f32 %v2818_v63, %v2817_v18  ;;  %v2736_v30 = vpop.f32.mrf.mxu1 }
 0x256   : > { %v2160_v53 = vrot.slane %v1035_v23, 7  ;;  %v2737_v36 = vadd.f32 %v2736_v30, %v2735_v21  ;;  %v2820_v38 = vpop.f32.mrf.mxu0 }
 0x257   : > { %v2738_v43 = vpop.f32.mrf.mxu1 }
 0x258   : > { %v1040_v45 = vadd.f32 %v2737_v36, %v4030_v24  ;;  %v2821_v49 = vpop.f32.mrf.mxu0  ;;  %v4111_v47 = vsel %vm2167_vm0, %v2160_v53, %v2144_v31  ;;  %v4115_v25 = vsel %vm2167_vm0, %v2144_v31, %v2160_v53 }
 0x259   : > { %v4117_v12 = vadd.f32 %v2821_v49, %v2820_v38  ;;  %v2739_v52 = vpop.f32.mrf.mxu1 }
 0x25a   : > { %v2740_v55 = vadd.f32 %v2739_v52, %v2738_v43  ;;  %v2823_v59 = vpop.f32.mrf.mxu0  ;;  %v2145_v26 = vrot.slane %v1040_v45, 7 }
 0x25b   : > { %v2741_v62 = vpop.f32.mrf.mxu1  ;;  %1922 = vmatmul.mubr.bf16.gmra.mxu1 %v3852_v46 }
 0x25c   : > { %v1043_v0 = vadd.f32 %v2740_v55, %v4035_v39  ;;  %v2824_v24 = vpop.f32.mrf.mxu0  ;;  %1929 = vmatprep.mubr.bf16.mxu1 %v3864_v57 }
 0x25d   : > { %v4122_v1 = vadd.f32 %v2824_v24, %v2823_v59  ;;  %v2742_v7 = vpop.f32.mrf.mxu1 }
 0x25e   : > { %v2161_v41 = vrot.slane %v1043_v0, 7  ;;  %v2743_v18 = vadd.f32 %v2742_v7, %v2741_v62  ;;  %v2826_v21 = vpop.f32.mrf.mxu0 }
 0x25f   : > { %v2744_v23 = vpop.f32.mrf.mxu1 }
 0x260   : > { %v1048_v63 = vadd.f32 %v4025_v22, %v2743_v18  ;;  %v2827_v30 = vpop.f32.mrf.mxu0  ;;  %v4127_v31 = vsel %vm2167_vm0, %v2161_v41, %v2145_v26  ;;  %v4131_v46 = vsel %vm2167_vm0, %v2145_v26, %v2161_v41 }
 0x261   : > { %v4133_v39 = vadd.f32 %v2827_v30, %v2826_v21  ;;  %v2745_v53 = vpop.f32.mrf.mxu1 }
 0x262   : > { %v2746_v36 = vadd.f32 %v2745_v53, %v2744_v23  ;;  %v2829_v38 = vpop.f32.mrf.mxu0  ;;  %v2146_v55 = vrot.slane %v1048_v63, 7 }
 0x263   : > { %v2747_v43 = vpop.f32.mrf.mxu1  ;;  %1930 = vmatmul.mubr.bf16.gmra.mxu1 %v3850_v44 }
 0x264   : > { %v1051_v45 = vadd.f32 %v4033_v35, %v2746_v36  ;;  %v2830_v22 = vpop.f32.mrf.mxu0  ;;  %1937 = vmatprep.mubr.bf16.mxu1 %v3862_v54 }
 0x265   : > { %v4138_v49 = vadd.f32 %v2830_v22, %v2829_v38  ;;  %v2748_v52 = vpop.f32.mrf.mxu1 }
 0x266   : > { %v2162_v59 = vrot.slane %v1051_v45, 7  ;;  %v2749_v62 = vadd.f32 %v2748_v52, %v2747_v43  ;;  %v2832_v0 = vpop.f32.mrf.mxu0 }
 0x267   : > { %v2750_v24 = vpop.f32.mrf.mxu1 }
 0x268   : > { %v1056_v7 = vadd.f32 %v2749_v62, %v4050_v50  ;;  %v2833_v26 = vpop.f32.mrf.mxu0  ;;  %v4143_v41 = vsel %vm2167_vm0, %v2162_v59, %v2146_v55  ;;  %v4147_v44 = vsel %vm2167_vm0, %v2146_v55, %v2162_v59 }
 0x269   : > { %v4149_v35 = vadd.f32 %v2833_v26, %v2832_v0  ;;  %v2751_v18 = vpop.f32.mrf.mxu1 }
 0x26a   : > { %v2752_v21 = vadd.f32 %v2751_v18, %v2750_v24  ;;  %v2835_v23 = vpop.f32.mrf.mxu0  ;;  %v2147_v38 = vrot.slane %v1056_v7, 7 }
 0x26b   : > { %v2753_v63 = vpop.f32.mrf.mxu1  ;;  %1938 = vmatmul.mubr.bf16.gmra.mxu1 %v3864_v57 }
 0x26c   : > { %v1059_v30 = vadd.f32 %v2752_v21, %v4056_v4  ;;  %v2836_v50 = vpop.f32.mrf.mxu0  ;;  %1945 = vmatprep.mubr.bf16.mxu1 %v3876_v3 }
 0x26d   : > { %v4154_v53 = vadd.f32 %v2836_v50, %v2835_v23  ;;  %v2754_v36 = vpop.f32.mrf.mxu1 }
 0x26e   : > { %v2163_v43 = vrot.slane %v1059_v30, 7  ;;  %v2755_v45 = vadd.f32 %v2754_v36, %v2753_v63  ;;  %v2838_v22 = vpop.f32.mrf.mxu0 }
 0x26f   : > { %v2756_v52 = vpop.f32.mrf.mxu1 }
 0x270   : > { %v1064_v55 = vadd.f32 %v4045_v48, %v2755_v45  ;;  %v2839_v59 = vpop.f32.mrf.mxu0  ;;  %v4159_v62 = vsel %vm2167_vm0, %v2163_v43, %v2147_v38  ;;  %v4163_v57 = vsel %vm2167_vm0, %v2147_v38, %v2163_v43 }
 0x271   : > { %v4165_v4 = vadd.f32 %v2839_v59, %v2838_v22  ;;  %v2757_v0 = vpop.f32.mrf.mxu1 }
 0x272   : > { %v2758_v24 = vadd.f32 %v2757_v0, %v2756_v52  ;;  %v2841_v7 = vpop.f32.mrf.mxu0  ;;  %v2148_v63 = vrot.slane %v1064_v55, 7 }
 0x273   : > { %v2759_v26 = vpop.f32.mrf.mxu1  ;;  %1946 = vmatmul.mubr.bf16.gmra.mxu1 %v3862_v54 }
 0x274   : > { %v1067_v18 = vadd.f32 %v4053_v29, %v2758_v24  ;;  %v2842_v48 = vpop.f32.mrf.mxu0  ;;  %1953 = vmatprep.mubr.bf16.mxu1 %v3874_v2 }
 0x275   : > { %v4170_v21 = vadd.f32 %v2842_v48, %v2841_v7  ;;  %v2760_v23 = vpop.f32.mrf.mxu1 }
 0x276   : > { %v2164_v30 = vrot.slane %v1067_v18, 7  ;;  %v2761_v50 = vadd.f32 %v2760_v23, %v2759_v26  ;;  %v2844_v36 = vpop.f32.mrf.mxu0 }
 0x277   : > { %v2762_v38 = vpop.f32.mrf.mxu1 }
 0x278   : > { %v4174_v43 = vsel %vm2167_vm0, %v2164_v30, %v2148_v63  ;;  %v1072_v45 = vadd.f32 %v2761_v50, %v4071_v13  ;;  %v2845_v54 = vpop.f32.mrf.mxu0  ;;  %v4179_v29 = vsel %vm2167_vm0, %v2148_v63, %v2164_v30  ;;  %v4190_v30 = vld [vmem:[%s4593_s4] ss:$0 sm:$0xff] }
 0x279   : > { %v4181_v2 = vadd.f32 %v2845_v54, %v2844_v36  ;;  %v2763_v22 = vpop.f32.mrf.mxu1 }
 0x27a   : > { %v2764_v52 = vadd.f32 %v2763_v22, %v2762_v38  ;;  %v2847_v55 = vpop.f32.mrf.mxu0  ;;  %v2149_v13 = vrot.slane %v1072_v45, 7 }
 0x27b   : > { %v2765_v59 = vpop.f32.mrf.mxu1  ;;  %1954 = vmatmul.mubr.bf16.gmra.mxu1 %v3876_v3 }
 0x27c   : > { %v1075_v0 = vadd.f32 %v2764_v52, %v4077_v33  ;;  %v2848_v24 = vpop.f32.mrf.mxu0  ;;  %v1329_v52 = vadd.f32 %v4106_v20, %v4190_v30 }
 0x27d   : > { %v4185_v7 = vadd.f32 %v2848_v24, %v2847_v55  ;;  %v2766_v26 = vpop.f32.mrf.mxu1  ;;  %v3572_v55 = vmov 0.0  }
 0x27e   : > { %v2165_v18 = vrot.slane %v1075_v0, 7  ;;  %v2767_v48 = vadd.f32 %v2766_v26, %v2765_v59  ;;  %v2850_v23 = vpop.f32.mrf.mxu0  ;;  %v1321_v59 = vadd.f32 %v4090_v19, %v4190_v30  ;;  %v1324_v19 = vadd.f32 %v4101_v14, %v4190_v30 }
 0x27f   : > { %v2768_v63 = vpop.f32.mrf.mxu1 }
 0x280   : > { %v1080_v3 = vadd.f32 %v4066_v11, %v2767_v48  ;;  %v2851_v50 = vpop.f32.mrf.mxu0  ;;  %v4196_v33 = vsel %vm2167_vm0, %v2165_v18, %v2149_v13  ;;  %v4200_v36 = vsel %vm2167_vm0, %v2149_v13, %v2165_v18  ;;  %v4207_v11 = vsel %vm2123_vm1, 1.0, %v3572_v55 }
 0x281   : > { %v4202_v38 = vadd.f32 %v2851_v50, %v2850_v23  ;;  %v2769_v45 = vpop.f32.mrf.mxu1  ;;  %v2202_v13 = vmul.f32 %v4207_v11, %v3971_v15  ;;  %v2200_v20 = vmul.f32 %v4207_v11, %v3963_v5 }
 0x282   : > { %v2770_v54 = vadd.f32 %v2769_v45, %v2768_v63  ;;  %v2853_v22 = vpop.f32.mrf.mxu0  ;;  %v1332_v63 = vadd.f32 %v4117_v12, %v4190_v30  ;;  %v2150_v50 = vrot.slane %v1080_v3, 7 }
 0x283   : > { %v3181_v0 = vpop.f32.mrf.mxu1 }
 0x284   : > { %v1083_v24 = vadd.f32 %v4074_v27, %v2770_v54  ;;  %v1490_v26 = vadd.f32 %v3181_v0, %v1329_v52  ;;  %v2854_v18 = vpop.f32.mrf.mxu0 }
 0x285   : > { %v4214_v48 = vadd.f32 %v2854_v18, %v2853_v22  ;;  %v1481_v23 = vpop.f32.mrf.mxu1 }
 0x286   : > { %v2166_v45 = vrot.slane %v1083_v24, 7  ;;  %v4222_v27 = vadd.f32 %v2202_v13, %v1490_v26  ;;  %v1482_v54 = vadd.f32 %v1481_v23, %v1321_v59  ;;  %v2856_v52 = vpop.f32.mrf.mxu0  ;;  %v1345_v13 = vadd.f32 %v4138_v49, %v4190_v30 }
 0x287   : > { %v3182_v15 = vpop.f32.mrf.mxu1  ;;  %v2204_v49 = vmul.f32 %v4207_v11, %v3983_v37 }
 0x288   : > { %v4226_v22 = vsel %vm2167_vm0, %v2166_v45, %v2150_v50  ;;  %v4228_v0 = vadd.f32 %v2200_v20, %v1482_v54  ;;  %v1493_v5 = vadd.f32 %v3182_v15, %v1332_v63  ;;  %v2857_v18 = vpop.f32.mrf.mxu0  ;;  %v4232_v12 = vsel %vm2167_vm0, %v2150_v50, %v2166_v45 }
 0x289   : > { %v4234_v14 = vadd.f32 %v2857_v18, %v2856_v52  ;;  %v1484_v3 = vpop.f32.mrf.mxu1  ;;  %v2206_v50 = vmul.f32 %v4207_v11, %v3999_v61  ;;  %v1337_v54 = vadd.f32 %v4122_v1, %v4190_v30  ;;  %v1340_v1 = vadd.f32 %v4133_v39, %v4190_v30 }
 0x28a   : > { %v4237_v24 = vadd.f32 %v3975_v16, %v1493_v5  ;;  %v1485_v59 = vadd.f32 %v1484_v3, %v1324_v19  ;;  %v2859_v26 = vpop.f32.mrf.mxu0 }
 0x28b   : > { %v3185_v23 = vpop.f32.mrf.mxu1 }
 0x28c   : > { %v4242_v20 = vadd.f32 %v3967_v6, %v1485_v59  ;;  %v1506_v63 = vadd.f32 %v3185_v23, %v1345_v13  ;;  %v2860_v45 = vpop.f32.mrf.mxu0  ;;  %v1348_v6 = vadd.f32 %v4149_v35, %v4190_v30 }
 0x28d   : > { %v4248_v52 = vadd.f32 %v2860_v45, %v2859_v26  ;;  %v1497_v16 = vpop.f32.mrf.mxu1 }
 0x28e   : > { %v4250_v19 = vadd.f32 %v2206_v50, %v1506_v63  ;;  %v1498_v15 = vadd.f32 %v1497_v16, %v1337_v54  ;;  %v2862_v5 = vpop.f32.mrf.mxu0  ;;  %v1361_v50 = vadd.f32 %v4170_v21, %v4190_v30  ;;  %v2210_v16 = vmul.f32 %v4207_v11, %v4039_v56 }
 0x28f   : > { %v3186_v18 = vpop.f32.mrf.mxu1  ;;  %v2208_v21 = vmul.f32 %v4207_v11, %v4019_v58  ;;  %v1377_v58 = vadd.f32 %v4214_v48, %v4190_v30  ;;  %v2212_v48 = vmul.f32 %v4207_v11, %v4060_v10 }
 0x290   : > { %v4256_v3 = vadd.f32 %v2204_v49, %v1498_v15  ;;  %v1509_v61 = vadd.f32 %v3186_v18, %v1348_v6  ;;  %v2863_v59 = vpop.f32.mrf.mxu0  ;;  %v1353_v15 = vadd.f32 %v4154_v53, %v4190_v30  ;;  %v1356_v53 = vadd.f32 %v4165_v4, %v4190_v30 }
 0x291   : > { %v4260_v26 = vadd.f32 %v2863_v59, %v2862_v5  ;;  %v1500_v13 = vpop.f32.mrf.mxu1  ;;  %v1369_v4 = vadd.f32 %v4185_v7, %v4190_v30  ;;  %v1372_v7 = vadd.f32 %v4202_v38, %v4190_v30  ;;  %v1385_v38 = vadd.f32 %v4248_v52, %v4190_v30 }
 0x292   : > { %v4263_v23 = vadd.f32 %v4003_v40, %v1509_v61  ;;  %v1501_v63 = vadd.f32 %v1500_v13, %v1340_v1  ;;  %v2865_v37 = vpop.f32.mrf.mxu0 }
 0x293   : > { %v3189_v35 = vpop.f32.mrf.mxu1 }
 0x294   : > { %v4268_v45 = vadd.f32 %v3987_v42, %v1501_v63  ;;  %v1522_v54 = vadd.f32 %v3189_v35, %v1361_v50  ;;  %v2866_v39 = vpop.f32.mrf.mxu0  ;;  %v1364_v42 = vadd.f32 %v4181_v2, %v4190_v30 }
 0x295   : > { %v2867_v49 = vadd.f32 %v2866_v39, %v2865_v37  ;;  %v1513_v40 = vpop.f32.mrf.mxu1  ;;  %v2214_v39 = vmul.f32 %v4207_v11, %v4081_v34 }
 0x296   : > { %v4274_v5 = vadd.f32 %v2210_v16, %v1522_v54  ;;  %v1514_v6 = vadd.f32 %v1513_v40, %v1353_v15  ;;  %v2868_v18 = vpop.f32.mrf.mxu0 }
 0x297   : > { %v3190_v61 = vpop.f32.mrf.mxu1  ;;  %v1393_v10 = vadd.f32 %v2867_v49, %v4190_v30  ;;  %v2216_v49 = vmul.f32 %v4207_v11, %v4095_v9 }
 0x298   : > { %v4280_v59 = vadd.f32 %v2208_v21, %v1514_v6  ;;  %v1525_v56 = vadd.f32 %v3190_v61, %v1364_v42  ;;  %v2869_v1 = vpop.f32.mrf.mxu0 }
 0x299   : > { %v2870_v13 = vadd.f32 %v2869_v1, %v2868_v18  ;;  %v1516_v63 = vpop.f32.mrf.mxu1 }
 0x29a   : > { %v4285_v37 = vadd.f32 %v4043_v32, %v1525_v56  ;;  %v1517_v50 = vadd.f32 %v1516_v63, %v1356_v53  ;;  %v2871_v35 = vpop.f32.mrf.mxu0 }
 0x29b   : > { %v3193_v54 = vpop.f32.mrf.mxu1 }
 0x29c   : > { %v4290_v2 = vadd.f32 %v4023_v17, %v1517_v50  ;;  %v1538_v16 = vadd.f32 %v3193_v54, %v1377_v58  ;;  %v2872_v15 = vpop.f32.mrf.mxu0  ;;  %v1380_v17 = vadd.f32 %v4234_v14, %v4190_v30 }
 0x29d   : > { %v2873_v40 = vadd.f32 %v2872_v15, %v2871_v35  ;;  %v1529_v32 = vpop.f32.mrf.mxu1 }
 0x29e   : > { %v4296_v6 = vadd.f32 %v2214_v39, %v1538_v16  ;;  %v1530_v21 = vadd.f32 %v1529_v32, %v1369_v4  ;;  %v2874_v18 = vpop.f32.mrf.mxu0  ;;  %v2218_v16 = vmul.f32 %v4207_v11, %v4111_v47 }
 0x29f   : > { %v3194_v42 = vpop.f32.mrf.mxu1 }
 0x2a0   : > { %v4302_v61 = vadd.f32 %v2212_v48, %v1530_v21  ;;  %v1541_v34 = vadd.f32 %v3194_v42, %v1380_v17  ;;  %v2875_v56 = vpop.f32.mrf.mxu0  ;;  %v1388_v42 = vadd.f32 %v4260_v26, %v4190_v30  ;;  %v1401_v26 = vadd.f32 %v2873_v40, %v4190_v30 }
 0x2a1   : > { %v2876_v1 = vadd.f32 %v2875_v56, %v2874_v18  ;;  %v1532_v53 = vpop.f32.mrf.mxu1 }
 0x2a2   : > { %v4307_v63 = vadd.f32 %v4085_v8, %v1541_v34  ;;  %v1533_v50 = vadd.f32 %v1532_v53, %v1372_v7  ;;  %v2877_v35 = vpop.f32.mrf.mxu0 }
 0x2a3   : > { %v3197_v58 = vpop.f32.mrf.mxu1 }
 0x2a4   : > { %v4311_v14 = vadd.f32 %v4064_v60, %v1533_v50  ;;  %v1554_v54 = vadd.f32 %v3197_v58, %v1393_v10  ;;  %v2878_v39 = vpop.f32.mrf.mxu0  ;;  %v1396_v60 = vadd.f32 %v2870_v13, %v4190_v30  ;;  %v2222_v10 = vmul.f32 %v4207_v11, %v4143_v41 }
 0x2a5   : > { %v2879_v15 = vadd.f32 %v2878_v39, %v2877_v35  ;;  %v1545_v4 = vpop.f32.mrf.mxu1  ;;  %v1404_v41 = vadd.f32 %v2876_v1, %v4190_v30  ;;  %v2224_v1 = vmul.f32 %v4207_v11, %v4159_v62 }
 0x2a6   : > { %v4317_v8 = vadd.f32 %v2218_v16, %v1554_v54  ;;  %v1546_v32 = vadd.f32 %v1545_v4, %v1385_v38  ;;  %v2880_v21 = vpop.f32.mrf.mxu0  ;;  %v2220_v38 = vmul.f32 %v4207_v11, %v4127_v31 }
 0x2a7   : > { %v3198_v48 = vpop.f32.mrf.mxu1  ;;  %v1409_v9 = vadd.f32 %v2879_v15, %v4190_v30 }
 0x2a8   : > { %v4322_v18 = vadd.f32 %v2216_v49, %v1546_v32  ;;  %v1557_v17 = vadd.f32 %v3198_v48, %v1396_v60  ;;  %v2881_v47 = vpop.f32.mrf.mxu0 }
 0x2a9   : > { %v2882_v52 = vadd.f32 %v2881_v47, %v2880_v21  ;;  %v1548_v34 = vpop.f32.mrf.mxu1 }
 0x2aa   : > { %v4327_v56 = vadd.f32 %v4115_v25, %v1557_v17  ;;  %v1549_v7 = vadd.f32 %v1548_v34, %v1388_v42  ;;  %v2883_v53 = vpop.f32.mrf.mxu0 }
 0x2ab   : > { %v3201_v50 = vpop.f32.mrf.mxu1  ;;  %v1412_v4 = vadd.f32 %v2882_v52, %v4190_v30 }
 0x2ac   : > { %v4331_v13 = vadd.f32 %v4099_v28, %v1549_v7  ;;  %v1570_v35 = vadd.f32 %v3201_v50, %v1409_v9  ;;  %v2884_v58 = vpop.f32.mrf.mxu0 }
 0x2ad   : > { %v2885_v54 = vadd.f32 %v2884_v58, %v2883_v53  ;;  %v1561_v16 = vpop.f32.mrf.mxu1 }
 0x2ae   : > { %v4336_v39 = vadd.f32 %v2222_v10, %v1570_v35  ;;  %v1562_v25 = vadd.f32 %v1561_v16, %v1401_v26  ;;  %v2886_v15 = vpop.f32.mrf.mxu0  ;;  %v2226_v16 = vmul.f32 %v4207_v11, %v4174_v43 }
 0x2af   : > { %v3202_v28 = vpop.f32.mrf.mxu1  ;;  %v1417_v52 = vadd.f32 %v2885_v54, %v4190_v30 }
 0x2b0   : > { %v4341_v32 = vadd.f32 %v2220_v38, %v1562_v25  ;;  %v1573_v49 = vadd.f32 %v3202_v28, %v1412_v4  ;;  %v2887_v21 = vpop.f32.mrf.mxu0 }
 0x2b1   : > { %v2888_v60 = vadd.f32 %v2887_v21, %v2886_v15  ;;  %v1564_v40 = vpop.f32.mrf.mxu1 }
 0x2b2   : > { %v4345_v48 = vadd.f32 %v4147_v44, %v1573_v49  ;;  %v1565_v17 = vadd.f32 %v1564_v40, %v1404_v41  ;;  %v2889_v47 = vpop.f32.mrf.mxu0 }
 0x2b3   : > { %v3205_v42 = vpop.f32.mrf.mxu1  ;;  %v1420_v26 = vadd.f32 %v2888_v60, %v4190_v30 }
 0x2b4   : > { %v4348_v31 = vadd.f32 %v4131_v46, %v1565_v17  ;;  %v2890_v34 = vpop.f32.mrf.mxu0 }
 0x2b5   : > { %v2891_v7 = vadd.f32 %v2890_v34, %v2889_v47  ;;  %v1577_v53 = vpop.f32.mrf.mxu1 }
 0x2b6   : > { %v1578_v9 = vadd.f32 %v1577_v53, %v1417_v52  ;;  %v2892_v50 = vpop.f32.mrf.mxu0 }
 0x2b7   : > { %v1425_v35 = vadd.f32 %v2891_v7, %v4190_v30  ;;  %v3206_v44 = vpop.f32.mrf.mxu1  ;;  %v2228_v7 = vmul.f32 %v4207_v11, %v4196_v33 }
 0x2b8   : > { %v4354_v10 = vadd.f32 %v2224_v1, %v1578_v9  ;;  %v2893_v58 = vpop.f32.mrf.mxu0 }
 0x2b9   : > { %v1586_v46 = vadd.f32 %v3205_v42, %v1425_v35  ;;  %v2894_v54 = vadd.f32 %v2893_v58, %v2892_v50  ;;  %v1580_v25 = vpop.f32.mrf.mxu1 }
 0x2ba   : > { %v1581_v38 = vadd.f32 %v1580_v25, %v1420_v26  ;;  %v2895_v15 = vpop.f32.mrf.mxu0 }
 0x2bb   : > { %v4359_v4 = vadd.f32 %v2226_v16, %v1586_v46  ;;  %v1428_v62 = vadd.f32 %v2894_v54, %v4190_v30  ;;  %v3209_v28 = vpop.f32.mrf.mxu1 }
 0x2bc   : > { %v4363_v49 = vadd.f32 %v4163_v57, %v1581_v38  ;;  %v2896_v21 = vpop.f32.mrf.mxu0 }
 0x2bd   : > { %v1589_v41 = vadd.f32 %v3206_v44, %v1428_v62  ;;  %v2897_v40 = vadd.f32 %v2896_v21, %v2895_v15  ;;  %v1593_v60 = vpop.f32.mrf.mxu1  ;;  %v2230_v15 = vmul.f32 %v4207_v11, %v4226_v22 }
 0x2be   : > { %v2898_v17 = vpop.f32.mrf.mxu0 }
 0x2bf   : > { %v4366_v47 = vadd.f32 %v4179_v29, %v1589_v41  ;;  %v1433_v43 = vadd.f32 %v2897_v40, %v4190_v30  ;;  %v3210_v42 = vpop.f32.mrf.mxu1 }
 0x2c0   : > { %v2899_v34 = vpop.f32.mrf.mxu0 }
 0x2c1   : > { %v1594_v52 = vadd.f32 %v1593_v60, %v1433_v43  ;;  %v2900_v53 = vadd.f32 %v2899_v34, %v2898_v17  ;;  %v1596_v9 = vpop.f32.mrf.mxu1 }
 0x2c2   : > { %v2901_v57 = vpop.f32.mrf.mxu0 }
 0x2c3   : > { %v4371_v1 = vadd.f32 %v2228_v7, %v1594_v52  ;;  %v1436_v50 = vadd.f32 %v2900_v53, %v4190_v30  ;;  %v2947_v35 = vpop.f32.mrf.mxu1 }
 0x2c4   : > { %v2902_v44 = vpop.f32.mrf.mxu0 }
 0x2c5   : > { %v1597_v58 = vadd.f32 %v1596_v9, %v1436_v50  ;;  %v2903_v29 = vadd.f32 %v2902_v44, %v2901_v57  ;;  %v2948_v26 = vpop.f32.mrf.mxu1 }
 0x2c6   : > { %v2904_v46 = vpop.f32.mrf.mxu0  ;;  %v2949_v34 = vadd.f32 %v2948_v26, %v2947_v35 }
 0x2c7   : > { %v4375_v16 = vadd.f32 %v4200_v36, %v1597_v58  ;;  %v1441_v54 = vadd.f32 %v2903_v29, %v4190_v30  ;;  %v2950_v25 = vpop.f32.mrf.mxu1  ;;  %v571_v36 = vadd.s32 8, %v3954_v51 }
 0x2c8   : > { %v2905_v33 = vpop.f32.mrf.mxu0 }
 0x2c9   : > { %v1602_v38 = vadd.f32 %v3209_v28, %v1441_v54  ;;  %v2906_v62 = vadd.f32 %v2905_v33, %v2904_v46  ;;  %v2951_v21 = vpop.f32.mrf.mxu1  ;;  %vm2130_vm2 = vcmp.ne.s32.totalorder %v571_v36, 15 }
 0x2ca   : > { %v3229_v41 = vpop.f32.mrf.mxu0  ;;  %v2952_v11 = vadd.f32 %v2951_v21, %v2950_v25 }
 0x2cb   : > { %v4380_v40 = vadd.f32 %v2230_v15, %v1602_v38  ;;  %v1444_v60 = vadd.f32 %v2906_v62, %v4190_v30  ;;  %v2953_v17 = vpop.f32.mrf.mxu1 }
 0x2cc   : > { %v1996_v43 = vpop.f32.mrf.mxu0 }
 0x2cd   : > { %v1605_v52 = vadd.f32 %v3210_v42, %v1444_v60  ;;  %v2954_v7 = vpop.f32.mrf.mxu1  ;;  %v1997_v22 = vadd.f32 %v2949_v34, %v1996_v43  ;;  %v4389_v42 = vsel %vm2130_vm2, 1.0, %v3572_v55 }
 0x2ce   : > { %v2955_v53 = vadd.f32 %v2954_v7, %v2953_v17  ;;  %v3230_v9 = vpop.f32.mrf.mxu0 }
 0x2cf   : > { %v4385_v28 = vadd.f32 %v4232_v12, %v1605_v52  ;;  %v2956_v57 = vpop.f32.mrf.mxu1  ;;  %v2264_v35 = vrot.slane %v1997_v22, 1 }
 0x2d0   : > { %v1999_v50 = vpop.f32.mrf.mxu0  ;;  %v2005_v44 = vadd.f32 %v3229_v41, %v2955_v53 }
 0x2d1   : > { %v2000_v58 = vadd.f32 %v2952_v11, %v1999_v50  ;;  %v2957_v30 = vpop.f32.mrf.mxu1 }
 0x2d2   : > { %v2958_v29 = vadd.f32 %v2957_v30, %v2956_v57  ;;  %v3233_v46 = vpop.f32.mrf.mxu0  ;;  %v2265_v33 = vrot.slane %v2005_v44, 1 }
 0x2d3   : > { %v2280_v26 = vrot.slane %v2000_v58, 1  ;;  %v2959_v12 = vpop.f32.mrf.mxu1 }
 0x2d4   : > { %v2008_v54 = vadd.f32 %v3230_v9, %v2958_v29  ;;  %v2012_v25 = vpop.f32.mrf.mxu0 }
 0x2d5   : > { %v2297_v38 = vsel %vm2296_vm3, %v2264_v35, %v2280_v26  ;;  %v2313_v15 = vsel %vm2296_vm3, %v2280_v26, %v2264_v35  ;;  %v2960_v62 = vpop.f32.mrf.mxu1 }
 0x2d6   : > { %v2330_v21 = vmul.f32 %v4389_v42, %v2313_v15  ;;  %v2361_v41 = vadd.f32 %v2297_v38, %v4228_v0  ;;  %v2281_v60 = vrot.slane %v2008_v54, 1  ;;  %v2961_v55 = vadd.f32 %v2960_v62, %v2959_v12  ;;  %v3234_v17 = vpop.f32.mrf.mxu0 }
 0x2d7   : > { %v2962_v43 = vpop.f32.mrf.mxu1 }
 0x2d8   : > { %v2362_v36 = vadd.f32 %v2330_v21, %v4242_v20  ;;  %2393 = vst [vmem:[%s4400_s11] sm:$0xff] %v2361_v41  ;;  %v2298_v34 = vsel %vm2296_vm3, %v2265_v33, %v2281_v60  ;;  %v2314_v0 = vsel %vm2296_vm3, %v2281_v60, %v2265_v33  ;;  %v2013_v20 = vadd.f32 %v2961_v55, %v2012_v25  ;;  %v2015_v22 = vpop.f32.mrf.mxu0 }
 0x2d9   : > { %v2332_v52 = vmul.f32 %v4389_v42, %v2314_v0  ;;  %v2363_v7 = vadd.f32 %v2298_v34, %v4222_v27  ;;  %v2963_v53 = vpop.f32.mrf.mxu1 }
 0x2da   : > { %2394 = vst [vmem:[%s4400_s11 + $0x8] sm:$0xff] %v2362_v36  ;;  %v2964_v9 = vadd.f32 %v2963_v53, %v2962_v43  ;;  %v2266_v58 = vrot.slane %v2013_v20, 1  ;;  %v3237_v35 = vpop.f32.mrf.mxu0 }
 0x2db   : > { %v2364_v11 = vadd.f32 %v2332_v52, %v4237_v24  ;;  %2395 = vst [vmem:[%s4400_s11 + $0x10] sm:$0xff] %v2363_v7  ;;  %v2965_v57 = vpop.f32.mrf.mxu1 }
 0x2dc   : > { %v2016_v50 = vadd.f32 %v2964_v9, %v2015_v22  ;;  %v2028_v62 = vpop.f32.mrf.mxu0 }
 0x2dd   : > { %2396 = vst [vmem:[%s4400_s11 + $0x18] sm:$0xff] %v2364_v11  ;;  %v2966_v44 = vpop.f32.mrf.mxu1 }
 0x2de   : > { %v2282_v30 = vrot.slane %v2016_v50, 1  ;;  %v2967_v29 = vadd.f32 %v2966_v44, %v2965_v57  ;;  %v3238_v34 = vpop.f32.mrf.mxu0 }
 0x2df   : > { %v2968_v26 = vpop.f32.mrf.mxu1 }
 0x2e0   : > { %v2299_v27 = vsel %vm2296_vm3, %v2266_v58, %v2282_v30  ;;  %v2315_v12 = vsel %vm2296_vm3, %v2282_v30, %v2266_v58  ;;  %v2021_v33 = vadd.f32 %v3233_v46, %v2967_v29  ;;  %v2031_v20 = vpop.f32.mrf.mxu0 }
 0x2e1   : > { %v2334_v24 = vmul.f32 %v4389_v42, %v2315_v12  ;;  %v2365_v54 = vadd.f32 %v2299_v27, %v4256_v3  ;;  %v2969_v25 = vpop.f32.mrf.mxu1 }
 0x2e2   : > { %v2970_v38 = vadd.f32 %v2969_v25, %v2968_v26  ;;  %v2267_v55 = vrot.slane %v2021_v33, 1  ;;  %v3241_v30 = vpop.f32.mrf.mxu0 }
 0x2e3   : > { %v2366_v15 = vadd.f32 %v2334_v24, %v4268_v45  ;;  %2397 = vst [vmem:[%s4400_s11 + $0x20] sm:$0xff] %v2365_v54  ;;  %v2971_v21 = vpop.f32.mrf.mxu1 }
 0x2e4   : > { %v2024_v41 = vadd.f32 %v3234_v17, %v2970_v38  ;;  %v2044_v25 = vpop.f32.mrf.mxu0 }
 0x2e5   : > { %2398 = vst [vmem:[%s4400_s11 + $0x28] sm:$0xff] %v2366_v15  ;;  %v2972_v60 = vpop.f32.mrf.mxu1 }
 0x2e6   : > { %v2283_v43 = vrot.slane %v2024_v41, 1  ;;  %v2973_v36 = vadd.f32 %v2972_v60, %v2971_v21 }
 0x2e7   : > { %v2974_v0 = vpop.f32.mrf.mxu1 }
 0x2e8   : > { %v2300_v3 = vsel %vm2296_vm3, %v2267_v55, %v2283_v43  ;;  %v2316_v46 = vsel %vm2296_vm3, %v2283_v43, %v2267_v55  ;;  %v2029_v7 = vadd.f32 %v2973_v36, %v2028_v62  ;;  %v3242_v55 = vpop.f32.mrf.mxu0 }
 0x2e9   : > { %v2336_v45 = vmul.f32 %v4389_v42, %v2316_v46  ;;  %v2367_v52 = vadd.f32 %v2300_v3, %v4250_v19  ;;  %v2975_v17 = vpop.f32.mrf.mxu1 }
 0x2ea   : > { %v2976_v53 = vadd.f32 %v2975_v17, %v2974_v0  ;;  %v2268_v50 = vrot.slane %v2029_v7, 1  ;;  %v2047_v46 = vpop.f32.mrf.mxu0 }
 0x2eb   : > { %v2368_v9 = vadd.f32 %v2336_v45, %v4263_v23  ;;  %2399 = vst [vmem:[%s4400_s11 + $0x30] sm:$0xff] %v2367_v52  ;;  %v2977_v11 = vpop.f32.mrf.mxu1 }
 0x2ec   : > { %v2032_v22 = vadd.f32 %v2976_v53, %v2031_v20 }
 0x2ed   : > { %2400 = vst [vmem:[%s4400_s11 + $0x38] sm:$0xff] %v2368_v9  ;;  %v2978_v57 = vpop.f32.mrf.mxu1 }
 0x2ee   : > { %v2284_v44 = vrot.slane %v2032_v22, 1  ;;  %v2979_v58 = vadd.f32 %v2978_v57, %v2977_v11  ;;  %v3245_v11 = vpop.f32.mrf.mxu0 }
 0x2ef   : > { %v2980_v29 = vpop.f32.mrf.mxu1 }
 0x2f0   : > { %v2301_v19 = vsel %vm2296_vm3, %v2268_v50, %v2284_v44  ;;  %v2317_v26 = vsel %vm2296_vm3, %v2284_v44, %v2268_v50  ;;  %v2037_v24 = vadd.f32 %v3237_v35, %v2979_v58 }
 0x2f1   : > { %v2338_v23 = vmul.f32 %v4389_v42, %v2317_v26  ;;  %v2369_v27 = vadd.f32 %v2301_v19, %v4280_v59  ;;  %v2981_v12 = vpop.f32.mrf.mxu1  ;;  %v2060_v19 = vpop.f32.mrf.mxu0 }
 0x2f2   : > { %v2982_v54 = vadd.f32 %v2981_v12, %v2980_v29  ;;  %v2269_v21 = vrot.slane %v2037_v24, 1 }
 0x2f3   : > { %v2370_v33 = vadd.f32 %v2338_v23, %v4290_v2  ;;  %2401 = vst [vmem:[%s4400_s11 + $0x40] sm:$0xff] %v2369_v27  ;;  %v2983_v38 = vpop.f32.mrf.mxu1 }
 0x2f4   : > { %v2040_v15 = vadd.f32 %v3238_v34, %v2982_v54 }
 0x2f5   : > { %2402 = vst [vmem:[%s4400_s11 + $0x48] sm:$0xff] %v2370_v33  ;;  %v2984_v62 = vpop.f32.mrf.mxu1  ;;  %v3246_v33 = vpop.f32.mrf.mxu0 }
 0x2f6   : > { %v2285_v41 = vrot.slane %v2040_v15, 1  ;;  %v2985_v60 = vadd.f32 %v2984_v62, %v2983_v38 }
 0x2f7   : > { %v2986_v43 = vpop.f32.mrf.mxu1 }
 0x2f8   : > { %v2302_v59 = vsel %vm2296_vm3, %v2269_v21, %v2285_v41  ;;  %v2318_v35 = vsel %vm2296_vm3, %v2285_v41, %v2269_v21  ;;  %v2045_v0 = vadd.f32 %v2985_v60, %v2044_v25  ;;  %v2063_v60 = vpop.f32.mrf.mxu0 }
 0x2f9   : > { %v2340_v2 = vmul.f32 %v4389_v42, %v2318_v35  ;;  %v2371_v36 = vadd.f32 %v2302_v59, %v4274_v5  ;;  %v2987_v34 = vpop.f32.mrf.mxu1 }
 0x2fa   : > { %v2988_v3 = vadd.f32 %v2987_v34, %v2986_v43  ;;  %v2270_v53 = vrot.slane %v2045_v0, 1  ;;  %v3249_v0 = vpop.f32.mrf.mxu0 }
 0x2fb   : > { %v2372_v45 = vadd.f32 %v2340_v2, %v4285_v37  ;;  %2403 = vst [vmem:[%s4400_s11 + $0x50] sm:$0xff] %v2371_v36  ;;  %v2989_v52 = vpop.f32.mrf.mxu1 }
 0x2fc   : > { %v2048_v17 = vadd.f32 %v2988_v3, %v2047_v46 }
 0x2fd   : > { %2404 = vst [vmem:[%s4400_s11 + $0x58] sm:$0xff] %v2372_v45  ;;  %v2990_v7 = vpop.f32.mrf.mxu1 }
 0x2fe   : > { %v2286_v20 = vrot.slane %v2048_v17, 1  ;;  %v2991_v9 = vadd.f32 %v2990_v7, %v2989_v52 }
 0x2ff   : > { %v2992_v22 = vpop.f32.mrf.mxu1 }
 0x300   : > { %v2303_v5 = vsel %vm2296_vm3, %v2270_v53, %v2286_v20  ;;  %v2319_v57 = vsel %vm2296_vm3, %v2286_v20, %v2270_v53  ;;  %v2053_v58 = vadd.f32 %v3241_v30, %v2991_v9  ;;  %v2076_v53 = vpop.f32.mrf.mxu0 }
 0x301   : > { %v2342_v37 = vmul.f32 %v4389_v42, %v2319_v57  ;;  %v2373_v50 = vadd.f32 %v2303_v5, %v4302_v61  ;;  %v2993_v44 = vpop.f32.mrf.mxu1 }
 0x302   : > { %v2994_v29 = vadd.f32 %v2993_v44, %v2992_v22  ;;  %v2271_v24 = vrot.slane %v2053_v58, 1  ;;  %v3250_v44 = vpop.f32.mrf.mxu0 }
 0x303   : > { %v2374_v26 = vadd.f32 %v2342_v37, %v4311_v14  ;;  %2405 = vst [vmem:[%s4400_s11 + $0x60] sm:$0xff] %v2373_v50  ;;  %v2995_v23 = vpop.f32.mrf.mxu1 }
 0x304   : > { %v2056_v27 = vadd.f32 %v3242_v55, %v2994_v29 }
 0x305   : > { %2406 = vst [vmem:[%s4400_s11 + $0x68] sm:$0xff] %v2374_v26  ;;  %v2996_v12 = vpop.f32.mrf.mxu1 }
 0x306   : > { %v2287_v54 = vrot.slane %v2056_v27, 1  ;;  %v2997_v25 = vadd.f32 %v2996_v12, %v2995_v23  ;;  %v2079_v27 = vpop.f32.mrf.mxu0 }
 0x307   : > { %v2998_v38 = vpop.f32.mrf.mxu1 }
 0x308   : > { %v2304_v61 = vsel %vm2296_vm3, %v2271_v24, %v2287_v54  ;;  %v2320_v30 = vsel %vm2296_vm3, %v2287_v54, %v2271_v24  ;;  %v2061_v21 = vadd.f32 %v2997_v25, %v2060_v19 }
 0x309   : > { %v2344_v14 = vmul.f32 %v4389_v42, %v2320_v30  ;;  %v2375_v15 = vadd.f32 %v2304_v61, %v4296_v6  ;;  %v2999_v62 = vpop.f32.mrf.mxu1  ;;  %v3253_v30 = vpop.f32.mrf.mxu0 }
 0x30a   : > { %v3000_v41 = vadd.f32 %v2999_v62, %v2998_v38  ;;  %v2272_v2 = vrot.slane %v2061_v21, 1 }
 0x30b   : > { %v2376_v55 = vadd.f32 %v2344_v14, %v4307_v63  ;;  %2407 = vst [vmem:[%s4400_s11 + $0x70] sm:$0xff] %v2375_v15  ;;  %v3001_v43 = vpop.f32.mrf.mxu1 }
 0x30c   : > { %v2064_v59 = vadd.f32 %v3000_v41, %v2063_v60 }
 0x30d   : > { %2408 = vst [vmem:[%s4400_s11 + $0x78] sm:$0xff] %v2376_v55  ;;  %v3002_v35 = vpop.f32.mrf.mxu1  ;;  %v2092_v55 = vpop.f32.mrf.mxu0 }
 0x30e   : > { %v2288_v36 = vrot.slane %v2064_v59, 1  ;;  %v3003_v34 = vadd.f32 %v3002_v35, %v3001_v43 }
 0x30f   : > { %v3004_v3 = vpop.f32.mrf.mxu1 }
 0x310   : > { %v2305_v6 = vsel %vm2296_vm3, %v2272_v2, %v2288_v36  ;;  %v2321_v46 = vsel %vm2296_vm3, %v2288_v36, %v2272_v2  ;;  %v2069_v17 = vadd.f32 %v3245_v11, %v3003_v34 }
 0x311   : > { %v2346_v63 = vmul.f32 %v4389_v42, %v2321_v46  ;;  %v2377_v45 = vadd.f32 %v2305_v6, %v4322_v18  ;;  %v3005_v52 = vpop.f32.mrf.mxu1  ;;  %v3254_v6 = vpop.f32.mrf.mxu0 }
 0x312   : > { %v3006_v7 = vadd.f32 %v3005_v52, %v3004_v3  ;;  %v2273_v57 = vrot.slane %v2069_v17, 1 }
 0x313   : > { %v2378_v20 = vadd.f32 %v2346_v63, %v4331_v13  ;;  %2409 = vst [vmem:[%s4400_s11 + $0x80] sm:$0xff] %v2377_v45  ;;  %v3007_v9 = vpop.f32.mrf.mxu1 }
 0x314   : > { %v2072_v22 = vadd.f32 %v3246_v33, %v3006_v7  ;;  %v2095_v7 = vpop.f32.mrf.mxu0 }
 0x315   : > { %2410 = vst [vmem:[%s4400_s11 + $0x88] sm:$0xff] %v2378_v20  ;;  %v3008_v5 = vpop.f32.mrf.mxu1 }
 0x316   : > { %v2289_v37 = vrot.slane %v2072_v22, 1  ;;  %v3009_v50 = vadd.f32 %v3008_v5, %v3007_v9  ;;  %v3257_v5 = vpop.f32.mrf.mxu0 }
 0x317   : > { %v3010_v58 = vpop.f32.mrf.mxu1 }
 0x318   : > { %v2306_v18 = vsel %vm2296_vm3, %v2273_v57, %v2289_v37  ;;  %v2322_v11 = vsel %vm2296_vm3, %v2289_v37, %v2273_v57  ;;  %v2077_v26 = vadd.f32 %v3009_v50, %v2076_v53 }
 0x319   : > { %v2348_v13 = vmul.f32 %v4389_v42, %v2322_v11  ;;  %v2379_v29 = vadd.f32 %v2306_v18, %v4317_v8  ;;  %v3011_v19 = vpop.f32.mrf.mxu1 }
 0x31a   : > { %v3012_v23 = vadd.f32 %v3011_v19, %v3010_v58  ;;  %v2274_v33 = vrot.slane %v2077_v26, 1 }
 0x31b   : > { %v2380_v12 = vadd.f32 %v2348_v13, %v4327_v56  ;;  %2411 = vst [vmem:[%s4400_s11 + $0x90] sm:$0xff] %v2379_v29  ;;  %v3013_v24 = vpop.f32.mrf.mxu1  ;;  %v2108_v13 = vpop.f32.mrf.mxu0 }
 0x31c   : > { %v2080_v54 = vadd.f32 %v3012_v23, %v2079_v27 }
 0x31d   : > { %2412 = vst [vmem:[%s4400_s11 + $0x98] sm:$0xff] %v2380_v12  ;;  %v3014_v25 = vpop.f32.mrf.mxu1 }
 0x31e   : > { %v2290_v38 = vrot.slane %v2080_v54, 1  ;;  %v3015_v61 = vadd.f32 %v3014_v25, %v3013_v24  ;;  %v3258_v24 = vpop.f32.mrf.mxu0 }
 0x31f   : > { %v3016_v14 = vpop.f32.mrf.mxu1 }
 0x320   : > { %v2307_v8 = vsel %vm2296_vm3, %v2274_v33, %v2290_v38  ;;  %v2323_v15 = vsel %vm2296_vm3, %v2290_v38, %v2274_v33  ;;  %v2085_v41 = vadd.f32 %v3249_v0, %v3015_v61 }
 0x321   : > { %v2350_v56 = vmul.f32 %v4389_v42, %v2323_v15  ;;  %v2381_v62 = vadd.f32 %v2307_v8, %v4341_v32  ;;  %v3017_v21 = vpop.f32.mrf.mxu1  ;;  %v2111_v8 = vpop.f32.mrf.mxu0 }
 0x322   : > { %v3018_v60 = vadd.f32 %v3017_v21, %v3016_v14  ;;  %v2275_v36 = vrot.slane %v2085_v41, 1 }
 0x323   : > { %v2382_v43 = vadd.f32 %v2350_v56, %v4348_v31  ;;  %2413 = vst [vmem:[%s4400_s11 + $0xa0] sm:$0xff] %v2381_v62  ;;  %v3019_v59 = vpop.f32.mrf.mxu1 }
 0x324   : > { %v2088_v35 = vadd.f32 %v3250_v44, %v3018_v60 }
 0x325   : > { %2414 = vst [vmem:[%s4400_s11 + $0xa8] sm:$0xff] %v2382_v43  ;;  %v3020_v2 = vpop.f32.mrf.mxu1 }
 0x326   : > { %v2291_v34 = vrot.slane %v2088_v35, 1  ;;  %v3021_v3 = vadd.f32 %v3020_v2, %v3019_v59 }
 0x327   : > { %v3022_v46 = vpop.f32.mrf.mxu1 }
 0x328   : > { %v2308_v32 = vsel %vm2296_vm3, %v2275_v36, %v2291_v34  ;;  %v2324_v0 = vsel %vm2296_vm3, %v2291_v34, %v2275_v36  ;;  %v2093_v52 = vadd.f32 %v3021_v3, %v2092_v55 }
 0x329   : > { %v2352_v31 = vmul.f32 %v4389_v42, %v2324_v0  ;;  %v2383_v63 = vadd.f32 %v2308_v32, %v4336_v39  ;;  %v3023_v45 = vpop.f32.mrf.mxu1 }
 0x32a   : > { %v3024_v17 = vadd.f32 %v3023_v45, %v3022_v46  ;;  %v2276_v57 = vrot.slane %v2093_v52, 1 }
 0x32b   : > { %v2384_v53 = vadd.f32 %v2352_v31, %v4345_v48  ;;  %2415 = vst [vmem:[%s4400_s11 + $0xb0] sm:$0xff] %v2383_v63  ;;  %v3025_v20 = vpop.f32.mrf.mxu1 }
 0x32c   : > { %v2096_v9 = vadd.f32 %v3024_v17, %v2095_v7 }
 0x32d   : > { %2416 = vst [vmem:[%s4400_s11 + $0xb8] sm:$0xff] %v2384_v53  ;;  %v3026_v22 = vpop.f32.mrf.mxu1 }
 0x32e   : > { %v2292_v37 = vrot.slane %v2096_v9, 1  ;;  %v3027_v50 = vadd.f32 %v3026_v22, %v3025_v20 }
 0x32f   : > { %v3028_v44 = vpop.f32.mrf.mxu1 }
 0x330   : > { %v2309_v39 = vsel %vm2296_vm3, %v2276_v57, %v2292_v37  ;;  %v2325_v58 = vsel %vm2296_vm3, %v2292_v37, %v2276_v57  ;;  %v2101_v29 = vadd.f32 %v3253_v30, %v3027_v50 }
 0x331   : > { %v2354_v48 = vmul.f32 %v4389_v42, %v2325_v58  ;;  %v2385_v18 = vadd.f32 %v2309_v39, %v4354_v10  ;;  %v3029_v11 = vpop.f32.mrf.mxu1 }
 0x332   : > { %v3030_v19 = vadd.f32 %v3029_v11, %v3028_v44  ;;  %v2277_v54 = vrot.slane %v2101_v29, 1 }
 0x333   : > { %v2386_v26 = vadd.f32 %v2354_v48, %v4363_v49  ;;  %2417 = vst [vmem:[%s4400_s11 + $0xc0] sm:$0xff] %v2385_v18  ;;  %v3031_v23 = vpop.f32.mrf.mxu1 }
 0x334   : > { %v2104_v27 = vadd.f32 %v3254_v6, %v3030_v19 }
 0x335   : > { %2418 = vst [vmem:[%s4400_s11 + $0xc8] sm:$0xff] %v2386_v26  ;;  %v3032_v12 = vpop.f32.mrf.mxu1 }
 0x336   : > { %v2293_v25 = vrot.slane %v2104_v27, 1  ;;  %v3033_v33 = vadd.f32 %v3032_v12, %v3031_v23 }
 0x337   : > { %v3034_v38 = vpop.f32.mrf.mxu1 }
 0x338   : > { %v2310_v10 = vsel %vm2296_vm3, %v2277_v54, %v2293_v25  ;;  %v2326_v61 = vsel %vm2296_vm3, %v2293_v25, %v2277_v54  ;;  %v2109_v15 = vadd.f32 %v3033_v33, %v2108_v13 }
 0x339   : > { %v2356_v49 = vmul.f32 %v4389_v42, %v2326_v61  ;;  %v2387_v30 = vadd.f32 %v2310_v10, %v4359_v4  ;;  %v3035_v14 = vpop.f32.mrf.mxu1 }
 0x33a   : > { %v3036_v56 = vadd.f32 %v3035_v14, %v3034_v38  ;;  %v2278_v55 = vrot.slane %v2109_v15, 1 }
 0x33b   : > { %v2388_v62 = vadd.f32 %v2356_v49, %v4366_v47  ;;  %2419 = vst [vmem:[%s4400_s11 + $0xd0] sm:$0xff] %v2387_v30  ;;  %v3037_v21 = vpop.f32.mrf.mxu1 }
 0x33c   : > { %v2112_v41 = vadd.f32 %v3036_v56, %v2111_v8 }
 0x33d   : > { %2420 = vst [vmem:[%s4400_s11 + $0xd8] sm:$0xff] %v2388_v62  ;;  %v3038_v60 = vpop.f32.mrf.mxu1 }
 0x33e   : > { %v2294_v43 = vrot.slane %v2112_v41, 1  ;;  %v3039_v59 = vadd.f32 %v3038_v60, %v3037_v21 }
 0x33f   : > { %v3040_v35 = vpop.f32.mrf.mxu1 }
 0x340   : > { %v2311_v4 = vsel %vm2296_vm3, %v2278_v55, %v2294_v43  ;;  %v2327_v2 = vsel %vm2296_vm3, %v2294_v43, %v2278_v55  ;;  %v2117_v3 = vadd.f32 %v3257_v5, %v3039_v59 }
 0x341   : > { %v2358_v47 = vmul.f32 %v4389_v42, %v2327_v2  ;;  %v2389_v36 = vadd.f32 %v2311_v4, %v4371_v1  ;;  %v3041_v34 = vpop.f32.mrf.mxu1 }
 0x342   : > { %v3042_v6 = vadd.f32 %v3041_v34, %v3040_v35  ;;  %v2279_v0 = vrot.slane %v2117_v3, 1 }
 0x343   : > { %v2390_v46 = vadd.f32 %v2358_v47, %v4375_v16  ;;  %2421 = vst [vmem:[%s4400_s11 + $0xe0] sm:$0xff] %v2389_v36 }
 0x344   : > { %v2120_v32 = vadd.f32 %v3258_v24, %v3042_v6 }
 0x345   : > { %2422 = vst [vmem:[%s4400_s11 + $0xe8] sm:$0xff] %v2390_v46 }
 0x346   : > { %v2295_v31 = vrot.slane %v2120_v32, 1 }
 0x348   : > { %v2312_v63 = vsel %vm2296_vm3, %v2279_v0, %v2295_v31  ;;  %v2328_v1 = vsel %vm2296_vm3, %v2295_v31, %v2279_v0 }
 0x349   : > { %v2360_v45 = vmul.f32 %v4389_v42, %v2328_v1  ;;  %v2391_v16 = vadd.f32 %v2312_v63, %v4380_v40 }
 0x34b   : > { %v2392_v52 = vadd.f32 %v2360_v45, %v4385_v28  ;;  %2423 = vst [vmem:[%s4400_s11 + $0xf0] sm:$0xff] %v2391_v16 }
 0x34d   : > { %2424 = vst [vmem:[%s4400_s11 + $0xf8] sm:$0xff] %v2392_v52 }
 0x34e   : > { %3507 = shalt.err (!%p3504_p9)
}
 0x34f   : > { %s3508_s30 = scalar_lea.hbm %s4541_s9, 4096  ;;  %s3512_s8 = scalar_lea.hbm %s4594_s5, 8192 }
 0x350   : > { %p3509_p13 = scmp.ne.s32.totalorder %s4541_s9, %s3508_s30  ;;  %p3513_p4 = scmp.lt.s32.totalorder %s4541_s9, %s4594_s5 }
 0x351   : > { %p3514_p8 = scmp.lt.s32.totalorder %s3512_s8, %s3508_s30 }
 0x352   : > { %p3510_p5 = pnand %p3509_p13, %p4610_p10 }
 0x353   : > { %p3515_p3 = por %p3514_p8, %p3513_p4 }
 0x354   : > { %p3511_p0 = pneg %p3510_p5 }
 0x356   : > { %p3516_p11 = pnand %p3515_p3, %p3511_p0 }
 0x358   : > { %3519 = shalt.err (!%p3516_p11)
}
 0x359   : > { %s3574_s12 = smov 128   ;;  %s3575_s6 = smov 8  }
 0x35a   : > { %3269 = dma.vmem_to_hbm [thread:$0]  (%p4610_p10), %s4543_s28, 4096, %s4541_s9, %s2426_s22, %s3574_s12, %s3574_s12, %s3575_s6  }
 0x35b PF: > { %s2454_s7 = sand.u32 1, %s3550_s18   ;;  %p4611_p1 = scmp.ne.s32.totalorder %s4600_s25, 0 }
 0x35c   : > { %p4612_p2 = scmp.ge.s32.totalorder %s3562_s21, 2  ;;  %s2455_s13 = scalar_lea.sflag [#allocation4], %s2454_s7 }
 0x35e   : > { %p3283_p6 = pnand %p4612_p2, %p4611_p1 }
 0x360   : > { %p3284_p12 = pneg %p3283_p6 }
 0x362   : > { %3545 = dma.done.wait (%p3284_p12), %s2455_s13, 4096  }
 0x363   : > { %3547 = vsyncadd (%p3284_p12), %s2455_s13, 4294963200  ;;  %p19_p7 = scmp.ge.s32.totalorder %s3678_s15, 4   ;;  %s4613_s18 = smov %s3554_s19 }
 0x364   : > { %s4614_s19 = smov %s3558_s20  ;;  %s4615_s20 = smov %s3694_s27 }
 0x365   : > { %s4616_s21 = smov %s3678_s15  ;;  %21 = sbr.rel (!%p19_p7) target bundleno = 6 (0x6), region = 95 }
 0x36a   :  { %2460 = vsyncpa [#allocation3], 1 }
 0x36b   :  { %2462 = vsyncpa [#allocation3 + $0x1], 1 }
 0x36c   :  { %2463 = vsyncpa [#allocation6], 1 }
 0x36d   :  { %2464 = vsyncpa [#allocation4], 1 }
 0x36e   :  { %2466 = vsyncpa [#allocation4 + $0x1], 1 }

</bundles_post_ra>
